<compile_context>
chip_gen: v5e
topology: v5e:2x2
jax: 0.10.0
libtpu: 0.0.40
codegen_flags: <defaults>
</compile_context>

<pallas_src>
import functools

import jax
import jax.numpy as jnp
from jax.experimental import pallas as pl
from jax.experimental.pallas import tpu as pltpu


def _round_up(x, m):
    return ((x + m - 1) // m) * m


_VMEM_BUDGET = 12 * 1024 * 1024          # conservative working-set cap
_VMEM_LIMIT = 32 * 1024 * 1024           # scoped VMEM limit passed to Mosaic


# ----------------------------------------------------------------------------
# Fused conv-GEMM kernels (bf16 inputs, f32 MXU accumulation).
#   * optional fused LeakyReLU(0.2) epilogue (conv+LeakyReLU layers)
#   * optional per-M-tile BatchNorm partial statistics (sum / sumsq of the
#     pre-activation conv output) so BN never re-reads the activation.
# ----------------------------------------------------------------------------
def _gemm_fullk_kernel(*refs, leaky, want_stats):
    if want_stats:
        a_ref, w_ref, o_ref, sum_ref, sq_ref = refs
    else:
        a_ref, w_ref, o_ref = refs

    acc = jnp.dot(a_ref[...], w_ref[...], preferred_element_type=jnp.float32)

    if want_stats:
        s = jnp.sum(acc, axis=0, keepdims=True)                 # (1, tn) f32
        q = jnp.sum(acc * acc, axis=0, keepdims=True)
        sum_ref[0] = jnp.broadcast_to(s, (8, s.shape[-1]))
        sq_ref[0] = jnp.broadcast_to(q, (8, q.shape[-1]))

    if leaky:
        acc = jnp.where(acc > 0.0, acc, 0.2 * acc)              # epilogue in f32
    o_ref[...] = acc.astype(o_ref.dtype)


def _gemm_tiledk_kernel(*refs, leaky, want_stats):
    if want_stats:
        a_ref, w_ref, o_ref, sum_ref, sq_ref, acc_ref = refs
    else:
        a_ref, w_ref, o_ref, acc_ref = refs

    @pl.when(pl.program_id(2) == 0)
    def _():
        acc_ref[...] = jnp.zeros_like(acc_ref)

    acc_ref[...] += jnp.dot(a_ref[...], w_ref[...],
                            preferred_element_type=jnp.float32)

    @pl.when(pl.program_id(2) == pl.num_programs(2) - 1)
    def _():
        acc = acc_ref[...]
        if want_stats:
            s = jnp.sum(acc, axis=0, keepdims=True)
            q = jnp.sum(acc * acc, axis=0, keepdims=True)
            sum_ref[0] = jnp.broadcast_to(s, (8, s.shape[-1]))
            sq_ref[0] = jnp.broadcast_to(q, (8, q.shape[-1]))
        if leaky:
            acc = jnp.where(acc > 0.0, acc, 0.2 * acc)
        o_ref[...] = acc.astype(o_ref.dtype)


def _pick_tn(cout):
    if cout > 256 and cout % 256 == 0:
        return 256
    if cout > 256 and cout % 128 == 0:
        return 128
    return cout        # full-dim last block (lane-masked only when not %128)


def _pick_tm(m, k, *, a_bytes=2, a_tile_budget=4 << 20):
    """Largest M tile that keeps the (tm, K) A tile small, keeps zero-padding
    of M under ~12.5%, and leaves >=2 M tiles when possible (v7x 2-TC)."""
    cap = max(8, a_tile_budget // max(1, k * a_bytes))
    for c in (512, 256, 128, 64, 32, 16, 8):
        if c > cap:
            continue
        m_eff = _round_up(m, c)
        if m_eff // c < 2 and c > 8 and m > 16:
            continue                        # keep >=2 parallel M tiles
        if (m_eff - m) * 8 <= m or c == 8:
            return c
    return 8


def pallas_conv_gemm(a, w, *, leaky, want_stats, out_dtype):
    """a: (M, K) bf16 im2col matrix, w: (K, Cout) bf16.

    Returns (y, sums, sumsqs):
      y      : (M_eff, Cout) `out_dtype` conv output (rows >= M are zeros)
      sums   : (Cout,) f32 per-channel sum of the pre-activation output
      sumsqs : (Cout,) f32 per-channel sum of squares (None/None if no stats).
    """
    M, K = a.shape
    K2, Cout = w.shape
    assert K == K2

    tn = _pick_tn(Cout)
    nN = Cout // tn
    tm = _pick_tm(M, K)
    M_eff = _round_up(M, tm)
    if M_eff != M:
        a = jnp.pad(a, ((0, M_eff - M), (0, 0)))
    nM = M_eff // tm

    out_bytes = jnp.dtype(out_dtype).itemsize
    fullk_bytes = 2 * (tm * K * 2) + 2 * (K * tn * 2) + 2 * (tm * tn * out_bytes)

    cost = pl.CostEstimate(
        flops=2 * M_eff * Cout * K,
        transcendentals=0,
        bytes_accessed=int(a.nbytes) + int(w.nbytes) + M_eff * Cout * out_bytes)

    out_shapes = [jax.ShapeDtypeStruct((M_eff, Cout), out_dtype)]
    if want_stats:
        out_shapes += [jax.ShapeDtypeStruct((nM, 8, Cout), jnp.float32),
                       jax.ShapeDtypeStruct((nM, 8, Cout), jnp.float32)]

    if fullk_bytes <= _VMEM_BUDGET:
        # Full-K GEMM: weight block index is constant along the fast M axis,
        # so the weight stays VMEM-resident (fetched once per N tile).
        grid = (nN, nM)
        in_specs = [pl.BlockSpec((tm, K), lambda j, i: (i, 0)),
                    pl.BlockSpec((K, tn), lambda j, i: (0, j))]
        out_specs = [pl.BlockSpec((tm, tn), lambda j, i: (i, j))]
        if want_stats:
            out_specs += [pl.BlockSpec((1, 8, tn), lambda j, i: (i, 0, j)),
                          pl.BlockSpec((1, 8, tn), lambda j, i: (i, 0, j))]
        res = pl.pallas_call(
            functools.partial(_gemm_fullk_kernel, leaky=leaky,
                              want_stats=want_stats),
            out_shape=tuple(out_shapes) if want_stats else out_shapes[0],
            grid=grid,
            in_specs=in_specs,
            out_specs=tuple(out_specs) if want_stats else out_specs[0],
            compiler_params=pltpu.CompilerParams(
                dimension_semantics=("parallel", "parallel"),
                vmem_limit_bytes=_VMEM_LIMIT),
            cost_estimate=cost,
        )(a, w)
    else:
        # Large-K fallback: K tiled as the last ("arbitrary") grid axis with an
        # f32 VMEM accumulator; stats / epilogue / bf16 store at the last step.
        tk = K
        for c in (2048, 1024, 512, 256, 128):
            need = (2 * (tm * c * 2) + 2 * (c * tn * 2)
                    + tm * tn * 4 + 2 * (tm * tn * out_bytes))
            if K % c == 0 and need <= _VMEM_BUDGET:
                tk = c
                break
        grid = (nM, nN, K // tk)
        in_specs = [pl.BlockSpec((tm, tk), lambda i, j, k: (i, k)),
                    pl.BlockSpec((tk, tn), lambda i, j, k: (k, j))]
        out_specs = [pl.BlockSpec((tm, tn), lambda i, j, k: (i, j))]
        if want_stats:
            out_specs += [pl.BlockSpec((1, 8, tn), lambda i, j, k: (i, 0, j)),
                          pl.BlockSpec((1, 8, tn), lambda i, j, k: (i, 0, j))]
        res = pl.pallas_call(
            functools.partial(_gemm_tiledk_kernel, leaky=leaky,
                              want_stats=want_stats),
            out_shape=tuple(out_shapes) if want_stats else out_shapes[0],
            grid=grid,
            in_specs=in_specs,
            out_specs=tuple(out_specs) if want_stats else out_specs[0],
            scratch_shapes=[pltpu.VMEM((tm, tn), jnp.float32)],
            compiler_params=pltpu.CompilerParams(
                dimension_semantics=("parallel", "parallel", "arbitrary"),
                vmem_limit_bytes=_VMEM_LIMIT),
            cost_estimate=cost,
        )(a, w)

    if want_stats:
        y, psum, psq = res
        sums = jnp.sum(psum[:, 0, :], axis=0)       # tiny (nM, Cout) reduce
        sqs = jnp.sum(psq[:, 0, :], axis=0)
        return y, sums, sqs
    return res, None, None


# ----------------------------------------------------------------------------
# BatchNorm apply (scale/shift pre-folded in JAX) + LeakyReLU(0.2), bf16 I/O.
# ----------------------------------------------------------------------------
def _bn_apply_kernel(x_ref, scale_ref, shift_ref, o_ref):
    x = x_ref[...].astype(jnp.float32)
    y = x * scale_ref[...] + shift_ref[...]
    o_ref[...] = jnp.where(y > 0.0, y, 0.2 * y).astype(o_ref.dtype)


def pallas_bn_leaky(x, scale, shift):
    """x: (Mp, C) bf16 conv output; scale/shift: (C,) f32 folded BN affine."""
    Mp, C = x.shape
    tm = 8
    for c in (1024, 512, 256, 128, 64, 32, 16, 8):
        if Mp % c == 0 and c * C * 2 * 4 <= (8 << 20):
            tm = c
            break
    return pl.pallas_call(
        _bn_apply_kernel,
        out_shape=jax.ShapeDtypeStruct((Mp, C), x.dtype),
        grid=(Mp // tm,),
        in_specs=[pl.BlockSpec((tm, C), lambda i: (i, 0)),
                  pl.BlockSpec((1, C), lambda i: (0, 0)),
                  pl.BlockSpec((1, C), lambda i: (0, 0))],
        out_specs=pl.BlockSpec((tm, C), lambda i: (i, 0)),
        compiler_params=pltpu.CompilerParams(
            dimension_semantics=("parallel",),
            vmem_limit_bytes=_VMEM_LIMIT),
    )(x, scale.reshape(1, C), shift.reshape(1, C))


# ----------------------------------------------------------------------------
# JAX glue: channels-last im2col + conv wrapper
# ----------------------------------------------------------------------------
def im2col_3d_ndhwc(x, ksize, stride, pad):
    """x: (N, D, H, W, C) -> ((N*Do*Ho*Wo, kd*kh*kw*C), (Do, Ho, Wo)).

    Column order: (dz, dy, dx) slow, C fast — matched by the weight transpose
    in conv3d_gemm.
    """
    kd, kh, kw = ksize
    sd, sh, sw = stride
    pd, ph, pw = pad
    N, D, H, W, C = x.shape
    xp = jnp.pad(x, ((0, 0), (pd, pd), (ph, ph), (pw, pw), (0, 0)))
    Do = (D + 2 * pd - kd) // sd + 1
    Ho = (H + 2 * ph - kh) // sh + 1
    Wo = (W + 2 * pw - kw) // sw + 1
    cols = []
    for dz in range(kd):
        for dy in range(kh):
            for dx in range(kw):
                cols.append(xp[:,
                               dz:dz + (Do - 1) * sd + 1:sd,
                               dy:dy + (Ho - 1) * sh + 1:sh,
                               dx:dx + (Wo - 1) * sw + 1:sw, :])
    patches = jnp.stack(cols, axis=4)            # (N, Do, Ho, Wo, taps, C)
    return patches.reshape(N * Do * Ho * Wo, kd * kh * kw * C), (Do, Ho, Wo)


def conv3d_gemm(x_ndhwc, w, stride, pad, *, leaky, want_stats, out_dtype):
    """x: (N, D, H, W, Cin); w: PyTorch layout (Cout, Cin, kd, kh, kw)."""
    Cout, Cin, kd, kh, kw = w.shape
    N = x_ndhwc.shape[0]
    a, (Do, Ho, Wo) = im2col_3d_ndhwc(x_ndhwc.astype(jnp.bfloat16),
                                      (kd, kh, kw), stride, pad)
    M = N * Do * Ho * Wo
    # (Cout, Cin, kd, kh, kw) -> (kd, kh, kw, Cin, Cout), matching im2col cols.
    wmat = jnp.transpose(w, (2, 3, 4, 1, 0)).reshape(kd * kh * kw * Cin, Cout)
    y, sums, sqs = pallas_conv_gemm(a, wmat.astype(jnp.bfloat16),
                                    leaky=leaky, want_stats=want_stats,
                                    out_dtype=out_dtype)
    return y, sums, sqs, (Do, Ho, Wo), M, Cout


# ----------------------------------------------------------------------------
# Encoder: deterministic parameter construction + forward
# ----------------------------------------------------------------------------
def encoder_init(key, size, finnal_channel, org_channel, conv_channel):
    assert size % 16 == 0
    keys = jax.random.split(key, 16)
    ki = 0
    layers = []

    # initial conv: Conv3d(org, conv, [3,4,4], stride 2, pad 1, no bias) + LeakyReLU
    layers.append(dict(
        kind="conv_leaky",
        w=0.05 * jax.random.normal(keys[ki], (conv_channel, org_channel, 3, 4, 4), jnp.float32),
        stride=(2, 2, 2), pad=(1, 1, 1)))
    ki += 1

    csize, cndf = size // 2, conv_channel
    while csize > 4:
        in_feat, out_feat = cndf, cndf * 2
        layers.append(dict(
            kind="conv_bn_leaky",
            w=0.05 * jax.random.normal(keys[ki], (out_feat, in_feat, 3, 4, 4), jnp.float32),
            gamma=jnp.ones((out_feat,), jnp.float32),   # PyTorch BatchNorm3d default init
            beta=jnp.zeros((out_feat,), jnp.float32),
            stride=(2, 2, 2), pad=(1, 1, 1)))
        ki += 1
        cndf *= 2
        csize //= 2

    # final conv: Conv3d(cndf, finnal, [1,4,4], stride 1, pad 0, no bias)
    layers.append(dict(
        kind="conv",
        w=0.05 * jax.random.normal(keys[ki], (finnal_channel, cndf, 1, 4, 4), jnp.float32),
        stride=(1, 1, 1), pad=(0, 0, 0)))
    return layers


def encoder_forward(layers, x):
    """x: (N, Cin, D, H, W) NCDHW (PyTorch layout) -> NCDHW output (f32)."""
    N = x.shape[0]
    h = jnp.transpose(x, (0, 2, 3, 4, 1))        # channels-last end-to-end
    for p in layers:
        if p["kind"] == "conv_leaky":
            y, _, _, (Do, Ho, Wo), M, Cout = conv3d_gemm(
                h, p["w"], p["stride"], p["pad"],
                leaky=True, want_stats=False, out_dtype=jnp.bfloat16)
            h = y[:M].reshape(N, Do, Ho, Wo, Cout)
        elif p["kind"] == "conv_bn_leaky":
            y, ssum, ssq, (Do, Ho, Wo), M, Cout = conv3d_gemm(
                h, p["w"], p["stride"], p["pad"],
                leaky=False, want_stats=True, out_dtype=jnp.bfloat16)
            inv_m = 1.0 / M
            mean = ssum * inv_m
            var = jnp.maximum(ssq * inv_m - mean * mean, 0.0)   # biased (train-mode) var
            scale = p["gamma"] * jax.lax.rsqrt(var + 1e-5)
            shift = p["beta"] - mean * scale
            yb = pallas_bn_leaky(y, scale, shift)               # bf16 in / bf16 out
            h = yb[:M].reshape(N, Do, Ho, Wo, Cout)
        else:  # final conv, no activation, f32 output
            y, _, _, (Do, Ho, Wo), M, Cout = conv3d_gemm(
                h, p["w"], p["stride"], p["pad"],
                leaky=False, want_stats=False, out_dtype=jnp.float32)
            h = y[:M].reshape(N, Do, Ho, Wo, Cout)
    return jnp.transpose(h, (0, 4, 1, 2, 3))     # back to NCDHW


if __name__ == "__main__":
    key = jax.random.PRNGKey(0)
    k_param, k_x = jax.random.split(key)

    # Small shapes consistent with the module: size % 16 == 0
    size = 16
    org_channel = 3
    conv_channel = 8
    finnal_channel = 16
    N, D = 2, 8

    layers = encoder_init(k_param, size, finnal_channel, org_channel, conv_channel)
    x = jax.random.normal(k_x, (N, org_channel, D, size, size), jnp.float32)

    fwd = jax.jit(functools.partial(encoder_forward, layers))
    out = fwd(x)
    out = jax.block_until_ready(out)

    # Expected: (N, finnal_channel, 2, 1, 1) for D=8, size=16
    assert out.shape == (N, finnal_channel, 2, 1, 1), out.shape
    assert out.dtype == jnp.float32
    assert bool(jnp.all(jnp.isfinite(out)))
    print("KERNEL_OK")
</pallas_src>

<mosaic_0001>
module attributes {stable_mosaic.version = 11 : i64} {
  func.func @_gemm_fullk_kernel(%arg0: i32, %arg1: i32, %arg2: memref<256x144xbf16, #tpu.memory_space<vmem>>, %arg3: memref<144x8xbf16, #tpu.memory_space<vmem>>, %arg4: memref<256x8xbf16, #tpu.memory_space<vmem>>) attributes {dimension_semantics = [#tpu.dimension_semantics<parallel>, #tpu.dimension_semantics<parallel>], iteration_bounds = array<i64: 1, 2>, scalar_prefetch = 0 : i64, scratch_operands = 0 : i64, tpu.core_type = #tpu.core_type<tc>, window_params = [{transform_indices = @transform_0, window_bounds = array<i64: 256, 144>}, {transform_indices = @transform_1, window_bounds = array<i64: 144, 8>}, {transform_indices = @transform_2, window_bounds = array<i64: 256, 8>}]} {
    %c0 = arith.constant 0 : index
    %c0_0 = arith.constant 0 : index
    %0 = vector.load %arg2[%c0, %c0_0] : memref<256x144xbf16, #tpu.memory_space<vmem>>, vector<256x144xbf16>
    %c0_1 = arith.constant 0 : index
    %c0_2 = arith.constant 0 : index
    %1 = vector.load %arg3[%c0_1, %c0_2] : memref<144x8xbf16, #tpu.memory_space<vmem>>, vector<144x8xbf16>
    %cst = arith.constant dense<0.000000e+00> : vector<256x8xf32>
    %2 = tpu.matmul %0, %1, %cst {dimension_numbers = #tpu.dot_dimension_numbers<[1], [0], [0], [1], [0, 0, 1, 1], [], []>} : vector<256x144xbf16>, vector<144x8xbf16>, vector<256x8xf32> -> vector<256x8xf32>
    %cst_3 = arith.constant 0.000000e+00 : f32
    %3 = vector.broadcast %cst_3 : f32 to vector<256x8xf32>
    %4 = arith.cmpf ogt, %2, %3 : vector<256x8xf32>
    %cst_4 = arith.constant 2.000000e-01 : f32
    %5 = vector.broadcast %cst_4 : f32 to vector<256x8xf32>
    %6 = arith.mulf %5, %2 : vector<256x8xf32>
    %7 = arith.select %4, %2, %6 : vector<256x8xi1>, vector<256x8xf32>
    %8 = arith.truncf %7 : vector<256x8xf32> to vector<256x8xbf16>
    %c0_5 = arith.constant 0 : index
    %c0_6 = arith.constant 0 : index
    %9 = vector.load %arg4[%c0_5, %c0_6] : memref<256x8xbf16, #tpu.memory_space<vmem>>, vector<256x8xbf16>
    tpu.vector_store %arg4[%c0_5, %c0_6], %8 {strides = array<i32>} : memref<256x8xbf16, #tpu.memory_space<vmem>>, vector<256x8xbf16>,
    return
  }
  func.func @transform_0(%arg0: i32, %arg1: i32) -> (i32, i32) {
    %c0_i32 = arith.constant 0 : i32
    %c0_i32_0 = arith.constant 0 : i32
    return %arg1, %c0_i32 : i32, i32
  }
  func.func @transform_1(%arg0: i32, %arg1: i32) -> (i32, i32) {
    %c0_i32 = arith.constant 0 : i32
    %c0_i32_0 = arith.constant 0 : i32
    return %c0_i32, %arg0 : i32, i32
  }
  func.func @transform_2(%arg0: i32, %arg1: i32) -> (i32, i32) {
    %c0_i32 = arith.constant 0 : i32
    return %arg1, %arg0 : i32, i32
  }
}

module attributes {stable_mosaic.version = 11 : i64} {
  func.func @_gemm_fullk_kernel(%arg0: i32, %arg1: i32, %arg2: memref<32x384xbf16, #tpu.memory_space<vmem>>, %arg3: memref<384x16xbf16, #tpu.memory_space<vmem>>, %arg4: memref<32x16xbf16, #tpu.memory_space<vmem>>, %arg5: memref<1x8x16xf32, #tpu.memory_space<vmem>>, %arg6: memref<1x8x16xf32, #tpu.memory_space<vmem>>) attributes {dimension_semantics = [#tpu.dimension_semantics<parallel>, #tpu.dimension_semantics<parallel>], iteration_bounds = array<i64: 1, 2>, scalar_prefetch = 0 : i64, scratch_operands = 0 : i64, tpu.core_type = #tpu.core_type<tc>, window_params = [{transform_indices = @transform_0, window_bounds = array<i64: 32, 384>}, {transform_indices = @transform_1, window_bounds = array<i64: 384, 16>}, {transform_indices = @transform_2, window_bounds = array<i64: 32, 16>}, {transform_indices = @transform_3, window_bounds = array<i64: 1, 8, 16>}, {transform_indices = @transform_4, window_bounds = array<i64: 1, 8, 16>}]} {
    %c0 = arith.constant 0 : index
    %c0_0 = arith.constant 0 : index
    %0 = vector.load %arg2[%c0, %c0_0] : memref<32x384xbf16, #tpu.memory_space<vmem>>, vector<32x384xbf16>
    %c0_1 = arith.constant 0 : index
    %c0_2 = arith.constant 0 : index
    %1 = vector.load %arg3[%c0_1, %c0_2] : memref<384x16xbf16, #tpu.memory_space<vmem>>, vector<384x16xbf16>
    %cst = arith.constant dense<0.000000e+00> : vector<32x16xf32>
    %2 = tpu.matmul %0, %1, %cst {dimension_numbers = #tpu.dot_dimension_numbers<[1], [0], [0], [1], [0, 0, 1, 1], [], []>} : vector<32x384xbf16>, vector<384x16xbf16>, vector<32x16xf32> -> vector<32x16xf32>
    %cst_3 = arith.constant dense<0.000000e+00> : vector<16xf32>
    %3 = vector.multi_reduction <add>, %2, %cst_3 [0] : vector<32x16xf32> to vector<16xf32>
    %4 = vector.shape_cast %3 : vector<16xf32> to vector<1x16xf32>
    %5 = arith.mulf %2, %2 : vector<32x16xf32>
    %cst_4 = arith.constant dense<0.000000e+00> : vector<16xf32>
    %6 = vector.multi_reduction <add>, %5, %cst_4 [0] : vector<32x16xf32> to vector<16xf32>
    %7 = vector.shape_cast %6 : vector<16xf32> to vector<1x16xf32>
    %8 = vector.shape_cast %4 : vector<1x16xf32> to vector<1x16xf32>
    %9 = vector.broadcast %8 : vector<1x16xf32> to vector<8x16xf32>
    %c0_5 = arith.constant 0 : index
    %c0_6 = arith.constant 0 : index
    %c0_7 = arith.constant 0 : index
    %10 = vector.load %arg5[%c0_5, %c0_6, %c0_7] : memref<1x8x16xf32, #tpu.memory_space<vmem>>, vector<1x8x16xf32>
    %11 = vector.shape_cast %10 : vector<1x8x16xf32> to vector<8x16xf32>
    %12 = vector.shape_cast %9 : vector<8x16xf32> to vector<1x8x16xf32>
    tpu.vector_store %arg5[%c0_5, %c0_6, %c0_7], %12 {strides = array<i32>} : memref<1x8x16xf32, #tpu.memory_space<vmem>>, vector<1x8x16xf32>,
    %13 = vector.shape_cast %7 : vector<1x16xf32> to vector<1x16xf32>
    %14 = vector.broadcast %13 : vector<1x16xf32> to vector<8x16xf32>
    %c0_8 = arith.constant 0 : index
    %c0_9 = arith.constant 0 : index
    %c0_10 = arith.constant 0 : index
    %15 = vector.load %arg6[%c0_8, %c0_9, %c0_10] : memref<1x8x16xf32, #tpu.memory_space<vmem>>, vector<1x8x16xf32>
    %16 = vector.shape_cast %15 : vector<1x8x16xf32> to vector<8x16xf32>
    %17 = vector.shape_cast %14 : vector<8x16xf32> to vector<1x8x16xf32>
    tpu.vector_store %arg6[%c0_8, %c0_9, %c0_10], %17 {strides = array<i32>} : memref<1x8x16xf32, #tpu.memory_space<vmem>>, vector<1x8x16xf32>,
    %18 = arith.truncf %2 : vector<32x16xf32> to vector<32x16xbf16>
    %c0_11 = arith.constant 0 : index
    %c0_12 = arith.constant 0 : index
    %19 = vector.load %arg4[%c0_11, %c0_12] : memref<32x16xbf16, #tpu.memory_space<vmem>>, vector<32x16xbf16>
    tpu.vector_store %arg4[%c0_11, %c0_12], %18 {strides = array<i32>} : memref<32x16xbf16, #tpu.memory_space<vmem>>, vector<32x16xbf16>,
    return
  }
  func.func @transform_0(%arg0: i32, %arg1: i32) -> (i32, i32) {
    %c0_i32 = arith.constant 0 : i32
    %c0_i32_0 = arith.constant 0 : i32
    return %arg1, %c0_i32 : i32, i32
  }
  func.func @transform_1(%arg0: i32, %arg1: i32) -> (i32, i32) {
    %c0_i32 = arith.constant 0 : i32
    %c0_i32_0 = arith.constant 0 : i32
    return %c0_i32, %arg0 : i32, i32
  }
  func.func @transform_2(%arg0: i32, %arg1: i32) -> (i32, i32) {
    %c0_i32 = arith.constant 0 : i32
    return %arg1, %arg0 : i32, i32
  }
  func.func @transform_3(%arg0: i32, %arg1: i32) -> (i32, i32, i32) {
    %c0_i32 = arith.constant 0 : i32
    %c0_i32_0 = arith.constant 0 : i32
    return %arg1, %c0_i32, %arg0 : i32, i32, i32
  }
  func.func @transform_4(%arg0: i32, %arg1: i32) -> (i32, i32, i32) {
    %c0_i32 = arith.constant 0 : i32
    %c0_i32_0 = arith.constant 0 : i32
    return %arg1, %c0_i32, %arg0 : i32, i32, i32
  }
}

module attributes {stable_mosaic.version = 11 : i64} {
  func.func @_bn_apply_kernel(%arg0: i32, %arg1: memref<64x16xbf16, #tpu.memory_space<vmem>>, %arg2: memref<1x16xf32, #tpu.memory_space<vmem>>, %arg3: memref<1x16xf32, #tpu.memory_space<vmem>>, %arg4: memref<64x16xbf16, #tpu.memory_space<vmem>>) attributes {dimension_semantics = [#tpu.dimension_semantics<parallel>], iteration_bounds = array<i64: 1>, scalar_prefetch = 0 : i64, scratch_operands = 0 : i64, tpu.core_type = #tpu.core_type<tc>, window_params = [{transform_indices = @transform_0, window_bounds = array<i64: 64, 16>}, {pipeline_mode = #tpu.pipeline_mode<synchronous>, transform_indices = @transform_1, window_bounds = array<i64: 1, 16>}, {pipeline_mode = #tpu.pipeline_mode<synchronous>, transform_indices = @transform_2, window_bounds = array<i64: 1, 16>}, {transform_indices = @transform_3, window_bounds = array<i64: 64, 16>}]} {
    %c0 = arith.constant 0 : index
    %c0_0 = arith.constant 0 : index
    %0 = vector.load %arg1[%c0, %c0_0] : memref<64x16xbf16, #tpu.memory_space<vmem>>, vector<64x16xbf16>
    %1 = arith.extf %0 : vector<64x16xbf16> to vector<64x16xf32>
    %c0_1 = arith.constant 0 : index
    %c0_2 = arith.constant 0 : index
    %2 = vector.load %arg2[%c0_1, %c0_2] : memref<1x16xf32, #tpu.memory_space<vmem>>, vector<1x16xf32>
    %3 = vector.broadcast %2 : vector<1x16xf32> to vector<64x16xf32>
    %4 = arith.mulf %1, %3 : vector<64x16xf32>
    %c0_3 = arith.constant 0 : index
    %c0_4 = arith.constant 0 : index
    %5 = vector.load %arg3[%c0_3, %c0_4] : memref<1x16xf32, #tpu.memory_space<vmem>>, vector<1x16xf32>
    %6 = vector.broadcast %5 : vector<1x16xf32> to vector<64x16xf32>
    %7 = arith.addf %4, %6 : vector<64x16xf32>
    %cst = arith.constant 0.000000e+00 : f32
    %8 = vector.broadcast %cst : f32 to vector<64x16xf32>
    %9 = arith.cmpf ogt, %7, %8 : vector<64x16xf32>
    %cst_5 = arith.constant 2.000000e-01 : f32
    %10 = vector.broadcast %cst_5 : f32 to vector<64x16xf32>
    %11 = arith.mulf %10, %7 : vector<64x16xf32>
    %12 = arith.select %9, %7, %11 : vector<64x16xi1>, vector<64x16xf32>
    %13 = arith.truncf %12 : vector<64x16xf32> to vector<64x16xbf16>
    %c0_6 = arith.constant 0 : index
    %c0_7 = arith.constant 0 : index
    %14 = vector.load %arg4[%c0_6, %c0_7] : memref<64x16xbf16, #tpu.memory_space<vmem>>, vector<64x16xbf16>
    tpu.vector_store %arg4[%c0_6, %c0_7], %13 {strides = array<i32>} : memref<64x16xbf16, #tpu.memory_space<vmem>>, vector<64x16xbf16>,
    return
  }
  func.func @transform_0(%arg0: i32) -> (i32, i32) {
    %c0_i32 = arith.constant 0 : i32
    %c0_i32_0 = arith.constant 0 : i32
    return %arg0, %c0_i32 : i32, i32
  }
  func.func @transform_1(%arg0: i32) -> (i32, i32) {
    %c0_i32 = arith.constant 0 : i32
    %c0_i32_0 = arith.constant 0 : i32
    %c0_i32_1 = arith.constant 0 : i32
    return %c0_i32, %c0_i32_0 : i32, i32
  }
  func.func @transform_2(%arg0: i32) -> (i32, i32) {
    %c0_i32 = arith.constant 0 : i32
    %c0_i32_0 = arith.constant 0 : i32
    %c0_i32_1 = arith.constant 0 : i32
    return %c0_i32, %c0_i32_0 : i32, i32
  }
  func.func @transform_3(%arg0: i32) -> (i32, i32) {
    %c0_i32 = arith.constant 0 : i32
    %c0_i32_0 = arith.constant 0 : i32
    return %arg0, %c0_i32 : i32, i32
  }
}

module attributes {stable_mosaic.version = 11 : i64} {
  func.func @_gemm_fullk_kernel(%arg0: i32, %arg1: i32, %arg2: memref<8x256xbf16, #tpu.memory_space<vmem>>, %arg3: memref<256x16xbf16, #tpu.memory_space<vmem>>, %arg4: memref<8x16xf32, #tpu.memory_space<vmem>>) attributes {dimension_semantics = [#tpu.dimension_semantics<parallel>, #tpu.dimension_semantics<parallel>], iteration_bounds = array<i64: 1, 1>, scalar_prefetch = 0 : i64, scratch_operands = 0 : i64, tpu.core_type = #tpu.core_type<tc>, window_params = [{transform_indices = @transform_0, window_bounds = array<i64: 8, 256>}, {transform_indices = @transform_1, window_bounds = array<i64: 256, 16>}, {transform_indices = @transform_2, window_bounds = array<i64: 8, 16>}]} {
    %c0 = arith.constant 0 : index
    %c0_0 = arith.constant 0 : index
    %0 = vector.load %arg2[%c0, %c0_0] : memref<8x256xbf16, #tpu.memory_space<vmem>>, vector<8x256xbf16>
    %c0_1 = arith.constant 0 : index
    %c0_2 = arith.constant 0 : index
    %1 = vector.load %arg3[%c0_1, %c0_2] : memref<256x16xbf16, #tpu.memory_space<vmem>>, vector<256x16xbf16>
    %cst = arith.constant dense<0.000000e+00> : vector<8x16xf32>
    %2 = tpu.matmul %0, %1, %cst {dimension_numbers = #tpu.dot_dimension_numbers<[1], [0], [0], [1], [0, 0, 1, 1], [], []>} : vector<8x256xbf16>, vector<256x16xbf16>, vector<8x16xf32> -> vector<8x16xf32>
    %c0_3 = arith.constant 0 : index
    %c0_4 = arith.constant 0 : index
    %3 = vector.load %arg4[%c0_3, %c0_4] : memref<8x16xf32, #tpu.memory_space<vmem>>, vector<8x16xf32>
    tpu.vector_store %arg4[%c0_3, %c0_4], %2 {strides = array<i32>} : memref<8x16xf32, #tpu.memory_space<vmem>>, vector<8x16xf32>,
    return
  }
  func.func @transform_0(%arg0: i32, %arg1: i32) -> (i32, i32) {
    %c0_i32 = arith.constant 0 : i32
    %c0_i32_0 = arith.constant 0 : i32
    return %arg1, %c0_i32 : i32, i32
  }
  func.func @transform_1(%arg0: i32, %arg1: i32) -> (i32, i32) {
    %c0_i32 = arith.constant 0 : i32
    %c0_i32_0 = arith.constant 0 : i32
    return %c0_i32, %arg0 : i32, i32
  }
  func.func @transform_2(%arg0: i32, %arg1: i32) -> (i32, i32) {
    %c0_i32 = arith.constant 0 : i32
    return %arg1, %arg0 : i32, i32
  }
}

</mosaic_0001>

<bundles_post_ra>
// kernel: encoder_forward.4
= control target key start
LH: loop header
LB: loop body
LE: loop exit
PB: predicated region body
PF: predicated region fallthrough
CT: control target
= control target key end

     0   :  { %s1221_s9 = smov 0   ;;  %s1223_s10 = smov 0   ;;  %s1439_s0 = inlined_call_operand.vmem [shape: bf16[512,144], index: 0, kind: input, shape index: {}]   ;;  %s1440_s1 = inlined_call_operand.vmem [shape: bf16[144,8], index: 1, kind: input, shape index: {}]   ;;  %s1441_s2 = inlined_call_operand.vmem [shape: bf16[512,8], index: 2, kind: output, shape index: {}]  }
   0x1   :  { %s1225_s11 = smov 0  }
   0x2 LB: > { %s21_s12 = sadd.s32 1, %s1200_s10  ;;  %p919_p0 = scmp.ge.s32.totalorder %s1204_s11, 1  ;;  %s1204_s11 = sphi %s1225_s11, %s12_s11   ;;  %s1200_s10 = sphi %s1223_s10, %s1443_s10   ;;  %s1196_s9 = sphi %s1221_s9, %s1442_s9  }
   0x3   : > { %p22_p1 = scmp.ge.s32.totalorder %s21_s12, 2  ;;  %p137_p2 = scmp.lt.s32.totalorder %s1204_s11, 3 }
   0x5   : > { %s1445_s12 = smov (%p22_p1, %s21_s12), 0  ;;  %p138_p3 = pnand %p919_p0, %p137_p2 }
   0x6   : > { %s920_s17 = sshll.u32 (!%p138_p3), %s1196_s9, 5 }
   0x7   : > { %141 = sbr.rel (%p138_p3) target bundleno = 304 (0x130), region = 28  ;;  %p168_p4 = scmp.lt.s32.totalorder (!%p138_p3), %s920_s17, 63 }
   0xc   : > { %v1147_v0 = vld [vmem:[%s1440_s1 + $0x38] sm:$0xff]  ;;  %v1148_v1 = vld [vmem:[%s1440_s1 + $0x40] sm:$0xff]  ;;  %v1146_v2 = vld [vmem:[%s1440_s1 + $0x30] sm:$0xff]  ;;  %s1447_s17 = smov (!%p168_p4, %s920_s17), 63  ;;  %vm436_vm0 = vcmask 130048   ;;  %vm791_vm2 = vcmask 60416  }
   0xd   : > { %485 = vmatpush.bf16.msra.mxu0 %v1147_v0  ;;  %1149 = vmatpush.bf16.msra.mxu2 %v1147_v0  ;;  %s1107_s20 = sshll.u32 %s1447_s17, 3  ;;  %v1145_v3 = vld [vmem:[%s1440_s1 + $0x28] sm:$0xff]  ;;  %v1144_v7 = vld [vmem:[%s1440_s1 + $0x20] sm:$0xff]  ;;  %v1143_v11 = vld [vmem:[%s1440_s1 + $0x18] sm:$0xff]  ;;  %s924_s8 = sshll.u32 %s1447_s17, 2 }
   0xe   : > { %581 = vmatpush.bf16.msra.mxu1 %v1148_v1  ;;  %1157 = vmatpush.bf16.msra.mxu3 %v1148_v1  ;;  %s1254_s23 = scalar_lea.vmem %s1439_s0, %s1107_s20  ;;  %v1142_v12 = vld [vmem:[%s1440_s1 + $0x10] sm:$0xff]  ;;  %v1141_v16 = vld [vmem:[%s1440_s1 + $0x8] sm:$0xff]  ;;  %v1140_v20 = vld [vmem:[%s1440_s1] sm:$0xff]  ;;  %s1358_s14 = scalar_lea.vmem %s1441_s2, %s924_s8 }
   0xf   : > { %v1108_v4 = vld [vmem:[%s1254_s23 + $0x4] sm:$0xf]  ;;  %v929_v5 = vld [vmem:[%s1254_s23 + $0x8] sm:$0xf0]  ;;  %v1126_v8 = vld [vmem:[%s1254_s23 + $0x94] sm:$0xf] }
  0x10   : > { %v932_v6 = vor.u32 %v1108_v4, %v929_v5  ;;  %v1001_v9 = vld [vmem:[%s1254_s23 + $0x98] sm:$0xf0]  ;;  %v1110_v13 = vld [vmem:[%s1254_s23 + $0x14] sm:$0xf]  ;;  %v1128_v17 = vld [vmem:[%s1254_s23 + $0xa4] sm:$0xf] }
  0x11   : > { %486 = vmatpush.bf16.msra.mxu0 %v1146_v2  ;;  %1150 = vmatpush.bf16.msra.mxu2 %v1146_v2  ;;  %v1004_v10 = vor.u32 %v1126_v8, %v1001_v9  ;;  %v937_v14 = vld [vmem:[%s1254_s23 + $0x18] sm:$0xf0]  ;;  %v1009_v18 = vld [vmem:[%s1254_s23 + $0xa8] sm:$0xf0]  ;;  %v927_v21 = vld [vmem:[%s1254_s23] sm:$0xf] }
  0x12   : > { %1089 = vmatmul.msk.bf16.vlgmr.msra.gmra.mxu1 %vm436_vm0, %v932_v6  ;;  %v940_v15 = vor.u32 %v1110_v13, %v937_v14  ;;  %v1012_v19 = vor.u32 %v1128_v17, %v1009_v18  ;;  %v1109_v22 = vld [vmem:[%s1254_s23 + $0x4] sm:$0xf0]  ;;  %v991_v23 = vld [vmem:[%s1254_s23 + $0x80] sm:$0xf]  ;;  %v1112_v27 = vld [vmem:[%s1254_s23 + $0x24] sm:$0xf] }
  0x13   : > { %1098 = vmatmul.msk.bf16.vlgmr.msra.gmra.mxu3 %vm436_vm0, %v1004_v10  ;;  %v1125_v24 = vld [vmem:[%s1254_s23 + $0x84] sm:$0xf0]  ;;  %v928_v25 = vor.u32 %v1109_v22, %v927_v21  ;;  %v945_v28 = vld [vmem:[%s1254_s23 + $0x28] sm:$0xf0]  ;;  %v1130_v30 = vld [vmem:[%s1254_s23 + $0xb4] sm:$0xf] }
  0x14   : > { %v992_v26 = vor.u32 %v1125_v24, %v991_v23  ;;  %v948_v29 = vor.u32 %v1112_v27, %v945_v28  ;;  %v1017_v31 = vld [vmem:[%s1254_s23 + $0xb8] sm:$0xf0]  ;;  %v935_v33 = vld [vmem:[%s1254_s23 + $0x10] sm:$0xf]  ;;  %v1111_v34 = vld [vmem:[%s1254_s23 + $0x14] sm:$0xf0] }
  0x15   : > { %487 = vmatpush.bf16.msra.mxu0 %v1145_v3  ;;  %1151 = vmatpush.bf16.msra.mxu2 %v1145_v3  ;;  %v1020_v32 = vor.u32 %v1130_v30, %v1017_v31  ;;  %v999_v35 = vld [vmem:[%s1254_s23 + $0x90] sm:$0xf]  ;;  %v1127_v36 = vld [vmem:[%s1254_s23 + $0x94] sm:$0xf0]  ;;  %v936_v37 = vor.u32 %v1111_v34, %v935_v33  ;;  %v1114_v39 = vld [vmem:[%s1254_s23 + $0x34] sm:$0xf] }
  0x16   : > { %v1000_v38 = vor.u32 %v1127_v36, %v999_v35  ;;  %v953_v40 = vld [vmem:[%s1254_s23 + $0x38] sm:$0xf0]  ;;  %v1132_v42 = vld [vmem:[%s1254_s23 + $0xc4] sm:$0xf]  ;;  %v1025_v43 = vld [vmem:[%s1254_s23 + $0xc8] sm:$0xf0] }
  0x17   : > { %v956_v41 = vor.u32 %v1114_v39, %v953_v40  ;;  %v1028_v44 = vor.u32 %v1132_v42, %v1025_v43  ;;  %v943_v45 = vld [vmem:[%s1254_s23 + $0x20] sm:$0xf]  ;;  %v1113_v46 = vld [vmem:[%s1254_s23 + $0x24] sm:$0xf0]  ;;  %v1116_v51 = vld [vmem:[%s1254_s23 + $0x44] sm:$0xf] }
  0x18   : > { %v1007_v47 = vld [vmem:[%s1254_s23 + $0xa0] sm:$0xf]  ;;  %v1129_v48 = vld [vmem:[%s1254_s23 + $0xa4] sm:$0xf0]  ;;  %v944_v49 = vor.u32 %v1113_v46, %v943_v45  ;;  %v961_v52 = vld [vmem:[%s1254_s23 + $0x48] sm:$0xf0] }
  0x19   : > { %488 = vmatpush.bf16.msra.mxu0 %v1144_v7  ;;  %1152 = vmatpush.bf16.msra.mxu2 %v1144_v7  ;;  %v1008_v50 = vor.u32 %v1129_v48, %v1007_v47  ;;  %v964_v53 = vor.u32 %v1116_v51, %v961_v52  ;;  %v1134_v54 = vld [vmem:[%s1254_s23 + $0xd4] sm:$0xf]  ;;  %v1033_v55 = vld [vmem:[%s1254_s23 + $0xd8] sm:$0xf0]  ;;  %v951_v57 = vld [vmem:[%s1254_s23 + $0x30] sm:$0xf] }
  0x1a   : > { %v1036_v56 = vor.u32 %v1134_v54, %v1033_v55  ;;  %v1115_v58 = vld [vmem:[%s1254_s23 + $0x34] sm:$0xf0]  ;;  %v1015_v59 = vld [vmem:[%s1254_s23 + $0xb0] sm:$0xf]  ;;  %v1118_v63 = vld [vmem:[%s1254_s23 + $0x54] sm:$0xf] }
  0x1b   : > { %v1131_v60 = vld [vmem:[%s1254_s23 + $0xb4] sm:$0xf0]  ;;  %v952_v61 = vor.u32 %v1115_v58, %v951_v57  ;;  %v969_v0 = vld [vmem:[%s1254_s23 + $0x58] sm:$0xf0]  ;;  %v1136_v2 = vld [vmem:[%s1254_s23 + $0xe4] sm:$0xf] }
  0x1c   : > { %v1016_v62 = vor.u32 %v1131_v60, %v1015_v59  ;;  %v972_v1 = vor.u32 %v1118_v63, %v969_v0  ;;  %v1041_v3 = vld [vmem:[%s1254_s23 + $0xe8] sm:$0xf0]  ;;  %v959_v5 = vld [vmem:[%s1254_s23 + $0x40] sm:$0xf]  ;;  %v1117_v6 = vld [vmem:[%s1254_s23 + $0x44] sm:$0xf0] }
  0x1d   : > { %489 = vmatpush.bf16.msra.mxu0 %v1143_v11  ;;  %1153 = vmatpush.bf16.msra.mxu2 %v1143_v11  ;;  %v1044_v4 = vor.u32 %v1136_v2, %v1041_v3  ;;  %v1023_v7 = vld [vmem:[%s1254_s23 + $0xc0] sm:$0xf]  ;;  %v1133_v8 = vld [vmem:[%s1254_s23 + $0xc4] sm:$0xf0]  ;;  %v960_v9 = vor.u32 %v1117_v6, %v959_v5  ;;  %v1120_v11 = vld [vmem:[%s1254_s23 + $0x64] sm:$0xf] }
  0x1e   : > { %v1024_v10 = vor.u32 %v1133_v8, %v1023_v7  ;;  %v1138_v14 = vld [vmem:[%s1254_s23 + $0xf4] sm:$0xf]  ;;  %v967_v17 = vld [vmem:[%s1254_s23 + $0x50] sm:$0xf]  ;;  %v1119_v18 = vld [vmem:[%s1254_s23 + $0x54] sm:$0xf0] }
  0x1f   : > { %v968_v21 = vor.u32 %v1119_v18, %v967_v17  ;;  %v1122_v23 = vld [vmem:[%s1254_s23 + $0x74] sm:$0xf]  ;;  %v985_v24 = vld [vmem:[%s1254_s23 + $0x78] sm:$0xf0]  ;;  %v1121_v27 = vld [vmem:[%s1254_s23 + $0x64] sm:$0xf0] }
  0x20   : > { %v1039_v28 = vld [vmem:[%s1254_s23 + $0xe0] sm:$0xf]  ;;  %v993_v33 = vld [vmem:[%s1254_s23 + $0x88] sm:$0xf0]  ;;  %v983_v36 = vld [vmem:[%s1254_s23 + $0x70] sm:$0xf] }
  0x21   : > { %490 = vmatpush.bf16.msra.mxu0 %v1142_v12  ;;  %1154 = vmatpush.bf16.msra.mxu2 %v1142_v12  ;;  %v977_v12 = vld [vmem:[%s1254_s23 + $0x68] sm:$0xf0]  ;;  %v1139_v39 = vld [vmem:[%s1254_s23 + $0xf4] sm:$0xf0] }
  0x22   : > { %1090 = vmatmul.msk.bf16.gmra.mxu1 %vm436_vm0, %v940_v15  ;;  %v980_v13 = vor.u32 %v1120_v11, %v977_v12  ;;  %v1049_v15 = vld [vmem:[%s1254_s23 + $0xf8] sm:$0xf0] }
  0x23   : > { %1099 = vmatmul.msk.bf16.gmra.mxu3 %vm436_vm0, %v1012_v19  ;;  %v1031_v19 = vld [vmem:[%s1254_s23 + $0xd0] sm:$0xf] }
  0x25   : > { %491 = vmatpush.bf16.msra.mxu0 %v1141_v16  ;;  %1155 = vmatpush.bf16.msra.mxu2 %v1141_v16  ;;  %v1052_v16 = vor.u32 %v1138_v14, %v1049_v15 }
  0x29   : > { %492 = vmatpush.bf16.msra.mxu0 %v1140_v20  ;;  %1156 = vmatpush.bf16.msra.mxu2 %v1140_v20  ;;  %v1135_v20 = vld [vmem:[%s1254_s23 + $0xd4] sm:$0xf0] }
  0x2a   : > { %v1032_v22 = vor.u32 %v1135_v20, %v1031_v19 }
  0x2c   : > { %493 = vmatmul.bf16.vlgmr.msra.gmra.mxu0 %v928_v25  ;;  %533 = vmatmul.bf16.vlgmr.msra.gmra.mxu2 %v992_v26  ;;  %v988_v25 = vor.u32 %v1122_v23, %v985_v24  ;;  %v975_v26 = vld [vmem:[%s1254_s23 + $0x60] sm:$0xf] }
  0x2d   : > { %v976_v30 = vor.u32 %v1121_v27, %v975_v26 }
  0x32   : > { %1091 = vmatmul.msk.bf16.gmra.mxu1 %vm436_vm0, %v948_v29  ;;  %v1137_v29 = vld [vmem:[%s1254_s23 + $0xe4] sm:$0xf0] }
  0x33   : > { %1100 = vmatmul.msk.bf16.gmra.mxu3 %vm436_vm0, %v1020_v32  ;;  %v1040_v31 = vor.u32 %v1137_v29, %v1039_v28  ;;  %v1124_v32 = vld [vmem:[%s1254_s23 + $0x84] sm:$0xf] }
  0x34   : > { %v996_v34 = vor.u32 %v1124_v32, %v993_v33 }
  0x3c   : > { %498 = vmatmul.bf16.gmra.mxu0 %v936_v37  ;;  %538 = vmatmul.bf16.gmra.mxu2 %v1000_v38  ;;  %v1123_v37 = vld [vmem:[%s1254_s23 + $0x74] sm:$0xf0]  ;;  %v1047_v38 = vld [vmem:[%s1254_s23 + $0xf0] sm:$0xf] }
  0x3d   : > { %v984_v40 = vor.u32 %v1123_v37, %v983_v36 }
  0x42   : > { %1092 = vmatmul.msk.bf16.gmra.mxu1 %vm436_vm0, %v956_v41  ;;  %v1048_v41 = vor.u32 %v1139_v39, %v1047_v38 }
  0x43   : > { %1101 = vmatmul.msk.bf16.gmra.mxu3 %vm436_vm0, %v1028_v44 }
  0x4c   : > { %503 = vmatmul.bf16.gmra.mxu0 %v944_v49  ;;  %543 = vmatmul.bf16.gmra.mxu2 %v1008_v50 }
  0x52   : > { %1093 = vmatmul.msk.bf16.gmra.mxu1 %vm436_vm0, %v964_v53 }
  0x53   : > { %1102 = vmatmul.msk.bf16.gmra.mxu3 %vm436_vm0, %v1036_v56 }
  0x5c   : > { %508 = vmatmul.bf16.gmra.mxu0 %v952_v61  ;;  %548 = vmatmul.bf16.gmra.mxu2 %v1016_v62 }
  0x62   : > { %1094 = vmatmul.msk.bf16.gmra.mxu1 %vm436_vm0, %v972_v1 }
  0x63   : > { %1103 = vmatmul.msk.bf16.gmra.mxu3 %vm436_vm0, %v1044_v4 }
  0x6c   : > { %513 = vmatmul.bf16.gmra.mxu0 %v960_v9  ;;  %553 = vmatmul.bf16.gmra.mxu2 %v1024_v10 }
  0x72   : > { %1095 = vmatmul.msk.bf16.gmra.mxu1 %vm436_vm0, %v980_v13 }
  0x73   : > { %1104 = vmatmul.msk.bf16.gmra.mxu3 %vm436_vm0, %v1052_v16 }
  0x7c   : > { %518 = vmatmul.bf16.gmra.mxu0 %v968_v21  ;;  %558 = vmatmul.bf16.gmra.mxu2 %v1032_v22 }
  0x82   : > { %1096 = vmatmul.msk.bf16.gmra.mxu1 %vm436_vm0, %v988_v25 }
  0x8c   : > { %523 = vmatmul.bf16.gmra.mxu0 %v976_v30  ;;  %563 = vmatmul.bf16.gmra.mxu2 %v1040_v31 }
  0x8f   : > { %v583_v35 = vpop.f32.mrf.mxu1 }
  0x92   : > { %1097 = vmatmul.msk.bf16.gmra.mxu1 %vm436_vm0, %v996_v34 }
  0x96   : > { %v628_v44 = vpop.f32.mrf.mxu3 }
  0x97   : > { %v585_v42 = vpop.f32.mrf.mxu1 }
  0x9c   : > { %528 = vmatmul.bf16.gmra.mxu0 %v984_v40  ;;  %568 = vmatmul.bf16.gmra.mxu2 %v1048_v41 }
  0x9e   : > { %v630_v52 = vpop.f32.mrf.mxu3 }
  0x9f   : > { %v588_v43 = vpop.f32.mrf.mxu1 }
  0xa6   : > { %v633_v63 = vpop.f32.mrf.mxu3 }
  0xa7   : > { %v590_v47 = vpop.f32.mrf.mxu1 }
  0xa9   : > { %v494_v45 = vpop.f32.mrf.mxu0 }
  0xaa   : > { %v584_v46 = vadd.f32 %v583_v35, %v494_v45 }
  0xac   : > { %vm663_vm1 = vcmp.gt.f32.partialorder %v584_v46, 0.0  ;;  %v695_v48 = vmul.f32 0.2, %v584_v46 }
  0xae   : > { %v727_v49 = vsel %vm663_vm1, %v584_v46, %v695_v48  ;;  %v635_v10 = vpop.f32.mrf.mxu3 }
  0xaf   : > { %v759_v50 = vpack.c.bf16 %v727_v49, %v727_v49  ;;  %v1360_v51 = vpop.f32.mrf.mxu2  ;;  %v593_v55 = vpop.f32.mrf.mxu1 }
  0xb1   : > { %792 = vst.msk [vmem:[%s1358_s14] sm:$0xf] %vm791_vm2, %v759_v50  ;;  %v496_v53 = vpop.f32.mrf.mxu0 }
  0xb2   : > { %v586_v54 = vadd.f32 %v585_v42, %v496_v53 }
  0xb4   : > { %vm664_vm3 = vcmp.gt.f32.partialorder %v586_v54, 0.0  ;;  %v696_v56 = vmul.f32 0.2, %v586_v54 }
  0xb6   : > { %v728_v57 = vsel %vm664_vm3, %v586_v54, %v696_v56  ;;  %v638_v25 = vpop.f32.mrf.mxu3 }
  0xb7   : > { %v760_v58 = vpack.c.bf16 %v728_v57, %v728_v57  ;;  %v1364_v59 = vpop.f32.mrf.mxu2  ;;  %v595_v62 = vpop.f32.mrf.mxu1 }
  0xb9   : > { %793 = vst.msk [vmem:[%s1358_s14 + $0x4] sm:$0xf] %vm791_vm2, %v760_v58  ;;  %v499_v60 = vpop.f32.mrf.mxu0 }
  0xba   : > { %v589_v61 = vadd.f32 %v588_v43, %v499_v60 }
  0xbc   : > { %vm665_vm4 = vcmp.gt.f32.partialorder %v589_v61, 0.0  ;;  %v697_v0 = vmul.f32 0.2, %v589_v61 }
  0xbe   : > { %v729_v1 = vsel %vm665_vm4, %v589_v61, %v697_v0  ;;  %v640_v39 = vpop.f32.mrf.mxu3 }
  0xbf   : > { %v761_v2 = vpack.c.bf16 %v729_v1, %v729_v1  ;;  %v539_v3 = vpop.f32.mrf.mxu2  ;;  %v598_v7 = vpop.f32.mrf.mxu1 }
  0xc0   : > { %v629_v4 = vadd.f32 %v628_v44, %v539_v3 }
  0xc1   : > { %794 = vst.msk [vmem:[%s1358_s14 + $0x8] sm:$0xf] %vm791_vm2, %v761_v2  ;;  %v501_v5 = vpop.f32.mrf.mxu0 }
  0xc2   : > { %v591_v6 = vadd.f32 %v590_v47, %v501_v5  ;;  %vm681_vm5 = vcmp.gt.f32.partialorder %v629_v4, 0.0  ;;  %v713_v8 = vmul.f32 0.2, %v629_v4 }
  0xc4   : > { %vm666_vm6 = vcmp.gt.f32.partialorder %v591_v6, 0.0  ;;  %v698_v9 = vmul.f32 0.2, %v591_v6  ;;  %v745_v11 = vsel %vm681_vm5, %v629_v4, %v713_v8 }
  0xc5   : > { %v777_v12 = vpack.c.bf16 %v745_v11, %v745_v11 }
  0xc6   : > { %v730_v13 = vsel %vm666_vm6, %v591_v6, %v698_v9  ;;  %v643_v56 = vpop.f32.mrf.mxu3 }
  0xc7   : > { %v762_v14 = vpack.c.bf16 %v730_v13, %v730_v13  ;;  %810 = vst.msk [vmem:[%s1358_s14 + $0x48] sm:$0xf] %vm791_vm2, %v777_v12  ;;  %v541_v15 = vpop.f32.mrf.mxu2  ;;  %v600_v19 = vpop.f32.mrf.mxu1 }
  0xc8   : > { %v631_v16 = vadd.f32 %v630_v52, %v541_v15 }
  0xc9   : > { %795 = vst.msk [vmem:[%s1358_s14 + $0xc] sm:$0xf] %vm791_vm2, %v762_v14  ;;  %v504_v17 = vpop.f32.mrf.mxu0 }
  0xca   : > { %v594_v18 = vadd.f32 %v593_v55, %v504_v17  ;;  %vm682_vm7 = vcmp.gt.f32.partialorder %v631_v16, 0.0  ;;  %v714_v20 = vmul.f32 0.2, %v631_v16 }
  0xcc   : > { %vm667_vm8 = vcmp.gt.f32.partialorder %v594_v18, 0.0  ;;  %v699_v21 = vmul.f32 0.2, %v594_v18  ;;  %v746_v22 = vsel %vm682_vm7, %v631_v16, %v714_v20 }
  0xcd   : > { %v778_v23 = vpack.c.bf16 %v746_v22, %v746_v22 }
  0xce   : > { %v731_v24 = vsel %vm667_vm8, %v594_v18, %v699_v21 }
  0xcf   : > { %v763_v26 = vpack.c.bf16 %v731_v24, %v731_v24  ;;  %811 = vst.msk [vmem:[%s1358_s14 + $0x4c] sm:$0xf] %vm791_vm2, %v778_v23  ;;  %v544_v27 = vpop.f32.mrf.mxu2  ;;  %v603_v31 = vpop.f32.mrf.mxu1 }
  0xd0   : > { %v634_v28 = vadd.f32 %v633_v63, %v544_v27 }
  0xd1   : > { %796 = vst.msk [vmem:[%s1358_s14 + $0x10] sm:$0xf] %vm791_vm2, %v763_v26  ;;  %v506_v29 = vpop.f32.mrf.mxu0 }
  0xd2   : > { %v596_v30 = vadd.f32 %v595_v62, %v506_v29  ;;  %vm683_vm9 = vcmp.gt.f32.partialorder %v634_v28, 0.0  ;;  %v715_v32 = vmul.f32 0.2, %v634_v28 }
  0xd4   : > { %vm668_vm10 = vcmp.gt.f32.partialorder %v596_v30, 0.0  ;;  %v700_v33 = vmul.f32 0.2, %v596_v30  ;;  %v747_v34 = vsel %vm683_vm9, %v634_v28, %v715_v32 }
  0xd5   : > { %v779_v35 = vpack.c.bf16 %v747_v34, %v747_v34 }
  0xd6   : > { %v732_v36 = vsel %vm668_vm10, %v596_v30, %v700_v33 }
  0xd7   : > { %v764_v37 = vpack.c.bf16 %v732_v36, %v732_v36  ;;  %812 = vst.msk [vmem:[%s1358_s14 + $0x50] sm:$0xf] %vm791_vm2, %v779_v35  ;;  %v546_v38 = vpop.f32.mrf.mxu2  ;;  %v605_v43 = vpop.f32.mrf.mxu1 }
  0xd8   : > { %v636_v40 = vadd.f32 %v635_v10, %v546_v38 }
  0xd9   : > { %797 = vst.msk [vmem:[%s1358_s14 + $0x14] sm:$0xf] %vm791_vm2, %v764_v37  ;;  %v509_v41 = vpop.f32.mrf.mxu0 }
  0xda   : > { %v599_v42 = vadd.f32 %v598_v7, %v509_v41  ;;  %vm684_vm11 = vcmp.gt.f32.partialorder %v636_v40, 0.0  ;;  %v716_v44 = vmul.f32 0.2, %v636_v40  ;;  %v645_v7 = vpop.f32.mrf.mxu3 }
  0xdc   : > { %vm669_vm12 = vcmp.gt.f32.partialorder %v599_v42, 0.0  ;;  %v701_v45 = vmul.f32 0.2, %v599_v42  ;;  %v748_v46 = vsel %vm684_vm11, %v636_v40, %v716_v44 }
  0xdd   : > { %v780_v47 = vpack.c.bf16 %v748_v46, %v748_v46 }
  0xde   : > { %v733_v48 = vsel %vm669_vm12, %v599_v42, %v701_v45 }
  0xdf   : > { %v765_v49 = vpack.c.bf16 %v733_v48, %v733_v48  ;;  %813 = vst.msk [vmem:[%s1358_s14 + $0x54] sm:$0xf] %vm791_vm2, %v780_v47  ;;  %v549_v50 = vpop.f32.mrf.mxu2  ;;  %v608_v55 = vpop.f32.mrf.mxu1 }
  0xe0   : > { %v639_v52 = vadd.f32 %v638_v25, %v549_v50 }
  0xe1   : > { %798 = vst.msk [vmem:[%s1358_s14 + $0x18] sm:$0xf] %vm791_vm2, %v765_v49  ;;  %v511_v53 = vpop.f32.mrf.mxu0 }
  0xe2   : > { %v601_v54 = vadd.f32 %v600_v19, %v511_v53  ;;  %vm685_vm13 = vcmp.gt.f32.partialorder %v639_v52, 0.0  ;;  %v717_v57 = vmul.f32 0.2, %v639_v52  ;;  %v648_v22 = vpop.f32.mrf.mxu3 }
  0xe4   : > { %vm670_vm14 = vcmp.gt.f32.partialorder %v601_v54, 0.0  ;;  %v702_v58 = vmul.f32 0.2, %v601_v54  ;;  %v749_v60 = vsel %vm685_vm13, %v639_v52, %v717_v57 }
  0xe5   : > { %v781_v61 = vpack.c.bf16 %v749_v60, %v749_v60 }
  0xe6   : > { %v734_v62 = vsel %vm670_vm14, %v601_v54, %v702_v58 }
  0xe7   : > { %v766_v63 = vpack.c.bf16 %v734_v62, %v734_v62  ;;  %814 = vst.msk [vmem:[%s1358_s14 + $0x58] sm:$0xf] %vm791_vm2, %v781_v61  ;;  %v551_v0 = vpop.f32.mrf.mxu2  ;;  %v610_v4 = vpop.f32.mrf.mxu1 }
  0xe8   : > { %v641_v1 = vadd.f32 %v640_v39, %v551_v0 }
  0xe9   : > { %799 = vst.msk [vmem:[%s1358_s14 + $0x1c] sm:$0xf] %vm791_vm2, %v766_v63  ;;  %v514_v2 = vpop.f32.mrf.mxu0 }
  0xea   : > { %v604_v3 = vadd.f32 %v603_v31, %v514_v2  ;;  %vm686_vm15 = vcmp.gt.f32.partialorder %v641_v1, 0.0  ;;  %v718_v5 = vmul.f32 0.2, %v641_v1  ;;  %v650_v36 = vpop.f32.mrf.mxu3 }
  0xec   : > { %vm671_vm0 = vcmp.gt.f32.partialorder %v604_v3, 0.0  ;;  %v703_v6 = vmul.f32 0.2, %v604_v3  ;;  %v750_v8 = vsel %vm686_vm15, %v641_v1, %v718_v5 }
  0xed   : > { %v782_v9 = vpack.c.bf16 %v750_v8, %v750_v8 }
  0xee   : > { %v735_v10 = vsel %vm671_vm0, %v604_v3, %v703_v6 }
  0xef   : > { %v767_v11 = vpack.c.bf16 %v735_v10, %v735_v10  ;;  %815 = vst.msk [vmem:[%s1358_s14 + $0x5c] sm:$0xf] %vm791_vm2, %v782_v9  ;;  %v554_v12 = vpop.f32.mrf.mxu2  ;;  %v613_v16 = vpop.f32.mrf.mxu1 }
  0xf0   : > { %v644_v13 = vadd.f32 %v643_v56, %v554_v12 }
  0xf1   : > { %800 = vst.msk [vmem:[%s1358_s14 + $0x20] sm:$0xf] %vm791_vm2, %v767_v11  ;;  %v516_v14 = vpop.f32.mrf.mxu0 }
  0xf2   : > { %v606_v15 = vadd.f32 %v605_v43, %v516_v14  ;;  %vm687_vm1 = vcmp.gt.f32.partialorder %v644_v13, 0.0  ;;  %v719_v17 = vmul.f32 0.2, %v644_v13  ;;  %v653_v50 = vpop.f32.mrf.mxu3 }
  0xf4   : > { %vm672_vm3 = vcmp.gt.f32.partialorder %v606_v15, 0.0  ;;  %v704_v18 = vmul.f32 0.2, %v606_v15  ;;  %v751_v19 = vsel %vm687_vm1, %v644_v13, %v719_v17 }
  0xf5   : > { %v783_v20 = vpack.c.bf16 %v751_v19, %v751_v19 }
  0xf6   : > { %v736_v21 = vsel %vm672_vm3, %v606_v15, %v704_v18 }
  0xf7   : > { %v768_v23 = vpack.c.bf16 %v736_v21, %v736_v21  ;;  %816 = vst.msk [vmem:[%s1358_s14 + $0x60] sm:$0xf] %vm791_vm2, %v783_v20  ;;  %v556_v24 = vpop.f32.mrf.mxu2  ;;  %v615_v28 = vpop.f32.mrf.mxu1 }
  0xf8   : > { %v646_v25 = vadd.f32 %v645_v7, %v556_v24 }
  0xf9   : > { %801 = vst.msk [vmem:[%s1358_s14 + $0x24] sm:$0xf] %vm791_vm2, %v768_v23  ;;  %v519_v26 = vpop.f32.mrf.mxu0 }
  0xfa   : > { %v609_v27 = vadd.f32 %v608_v55, %v519_v26  ;;  %vm688_vm4 = vcmp.gt.f32.partialorder %v646_v25, 0.0  ;;  %v720_v29 = vmul.f32 0.2, %v646_v25 }
  0xfc   : > { %vm673_vm5 = vcmp.gt.f32.partialorder %v609_v27, 0.0  ;;  %v705_v30 = vmul.f32 0.2, %v609_v27  ;;  %v752_v31 = vsel %vm688_vm4, %v646_v25, %v720_v29 }
  0xfd   : > { %v784_v32 = vpack.c.bf16 %v752_v31, %v752_v31 }
  0xfe   : > { %v737_v33 = vsel %vm673_vm5, %v609_v27, %v705_v30 }
  0xff   : > { %v769_v34 = vpack.c.bf16 %v737_v33, %v737_v33  ;;  %817 = vst.msk [vmem:[%s1358_s14 + $0x64] sm:$0xf] %vm791_vm2, %v784_v32  ;;  %v559_v35 = vpop.f32.mrf.mxu2  ;;  %v618_v40 = vpop.f32.mrf.mxu1 }
 0x100   : > { %v649_v37 = vadd.f32 %v648_v22, %v559_v35 }
 0x101   : > { %802 = vst.msk [vmem:[%s1358_s14 + $0x28] sm:$0xf] %vm791_vm2, %v769_v34  ;;  %v521_v38 = vpop.f32.mrf.mxu0 }
 0x102   : > { %v611_v39 = vadd.f32 %v610_v4, %v521_v38  ;;  %vm689_vm6 = vcmp.gt.f32.partialorder %v649_v37, 0.0  ;;  %v721_v41 = vmul.f32 0.2, %v649_v37  ;;  %v655_v4 = vpop.f32.mrf.mxu3 }
 0x104   : > { %vm674_vm7 = vcmp.gt.f32.partialorder %v611_v39, 0.0  ;;  %v706_v42 = vmul.f32 0.2, %v611_v39  ;;  %v753_v43 = vsel %vm689_vm6, %v649_v37, %v721_v41 }
 0x105   : > { %v785_v44 = vpack.c.bf16 %v753_v43, %v753_v43 }
 0x106   : > { %v738_v45 = vsel %vm674_vm7, %v611_v39, %v706_v42 }
 0x107   : > { %v770_v46 = vpack.c.bf16 %v738_v45, %v738_v45  ;;  %818 = vst.msk [vmem:[%s1358_s14 + $0x68] sm:$0xf] %vm791_vm2, %v785_v44  ;;  %v561_v47 = vpop.f32.mrf.mxu2  ;;  %v620_v53 = vpop.f32.mrf.mxu1 }
 0x108   : > { %v651_v48 = vadd.f32 %v650_v36, %v561_v47 }
 0x109   : > { %803 = vst.msk [vmem:[%s1358_s14 + $0x2c] sm:$0xf] %vm791_vm2, %v770_v46  ;;  %v524_v49 = vpop.f32.mrf.mxu0 }
 0x10a   : > { %v614_v52 = vadd.f32 %v613_v16, %v524_v49  ;;  %vm690_vm8 = vcmp.gt.f32.partialorder %v651_v48, 0.0  ;;  %v722_v54 = vmul.f32 0.2, %v651_v48  ;;  %v658_v23 = vpop.f32.mrf.mxu3 }
 0x10c   : > { %vm675_vm9 = vcmp.gt.f32.partialorder %v614_v52, 0.0  ;;  %v707_v55 = vmul.f32 0.2, %v614_v52  ;;  %v754_v56 = vsel %vm690_vm8, %v651_v48, %v722_v54 }
 0x10d   : > { %v786_v57 = vpack.c.bf16 %v754_v56, %v754_v56 }
 0x10e   : > { %v739_v58 = vsel %vm675_vm9, %v614_v52, %v707_v55 }
 0x10f   : > { %v771_v60 = vpack.c.bf16 %v739_v58, %v739_v58  ;;  %819 = vst.msk [vmem:[%s1358_s14 + $0x6c] sm:$0xf] %vm791_vm2, %v786_v57  ;;  %v564_v61 = vpop.f32.mrf.mxu2  ;;  %v623_v1 = vpop.f32.mrf.mxu1 }
 0x110   : > { %v654_v62 = vadd.f32 %v653_v50, %v564_v61  ;;  %v624_v3 = vadd.f32 %v623_v1, %v1360_v51 }
 0x111   : > { %804 = vst.msk [vmem:[%s1358_s14 + $0x30] sm:$0xf] %vm791_vm2, %v771_v60  ;;  %v526_v63 = vpop.f32.mrf.mxu0 }
 0x112   : > { %v616_v0 = vadd.f32 %v615_v28, %v526_v63  ;;  %vm691_vm10 = vcmp.gt.f32.partialorder %v654_v62, 0.0  ;;  %v723_v2 = vmul.f32 0.2, %v654_v62  ;;  %vm679_vm12 = vcmp.gt.f32.partialorder %v624_v3, 0.0  ;;  %v660_v37 = vpop.f32.mrf.mxu3 }
 0x113   : > { %v711_v7 = vmul.f32 0.2, %v624_v3 }
 0x114   : > { %vm676_vm11 = vcmp.gt.f32.partialorder %v616_v0, 0.0  ;;  %v708_v5 = vmul.f32 0.2, %v616_v0  ;;  %v755_v6 = vsel %vm691_vm10, %v654_v62, %v723_v2 }
 0x115   : > { %v787_v8 = vpack.c.bf16 %v755_v6, %v755_v6  ;;  %v743_v11 = vsel %vm679_vm12, %v624_v3, %v711_v7 }
 0x116   : > { %v740_v9 = vsel %vm676_vm11, %v616_v0, %v708_v5  ;;  %v775_v12 = vpack.c.bf16 %v743_v11, %v743_v11 }
 0x117   : > { %v772_v10 = vpack.c.bf16 %v740_v9, %v740_v9  ;;  %820 = vst.msk [vmem:[%s1358_s14 + $0x70] sm:$0xf] %vm791_vm2, %v787_v8  ;;  %v566_v13 = vpop.f32.mrf.mxu2  ;;  %v625_v16 = vpop.f32.mrf.mxu1 }
 0x118   : > { %v656_v14 = vadd.f32 %v655_v4, %v566_v13  ;;  %808 = vst.msk [vmem:[%s1358_s14 + $0x40] sm:$0xf] %vm791_vm2, %v775_v12  ;;  %v626_v18 = vadd.f32 %v625_v16, %v1364_v59 }
 0x119   : > { %805 = vst.msk [vmem:[%s1358_s14 + $0x34] sm:$0xf] %vm791_vm2, %v772_v10  ;;  %v529_v15 = vpop.f32.mrf.mxu0 }
 0x11a   : > { %v619_v51 = vadd.f32 %v618_v40, %v529_v15  ;;  %vm692_vm13 = vcmp.gt.f32.partialorder %v656_v14, 0.0  ;;  %v724_v17 = vmul.f32 0.2, %v656_v14  ;;  %vm680_vm15 = vcmp.gt.f32.partialorder %v626_v18, 0.0 }
 0x11b   : > { %v712_v21 = vmul.f32 0.2, %v626_v18 }
 0x11c   : > { %vm677_vm14 = vcmp.gt.f32.partialorder %v619_v51, 0.0  ;;  %v709_v19 = vmul.f32 0.2, %v619_v51  ;;  %v756_v20 = vsel %vm692_vm13, %v656_v14, %v724_v17 }
 0x11d   : > { %v788_v22 = vpack.c.bf16 %v756_v20, %v756_v20  ;;  %v744_v26 = vsel %vm680_vm15, %v626_v18, %v712_v21 }
 0x11e   : > { %v741_v24 = vsel %vm677_vm14, %v619_v51, %v709_v19  ;;  %v776_v27 = vpack.c.bf16 %v744_v26, %v744_v26 }
 0x11f   : > { %v773_v25 = vpack.c.bf16 %v741_v24, %v741_v24  ;;  %821 = vst.msk [vmem:[%s1358_s14 + $0x74] sm:$0xf] %vm791_vm2, %v788_v22  ;;  %v569_v28 = vpop.f32.mrf.mxu2 }
 0x120   : > { %v659_v59 = vadd.f32 %v658_v23, %v569_v28  ;;  %809 = vst.msk [vmem:[%s1358_s14 + $0x44] sm:$0xf] %vm791_vm2, %v776_v27 }
 0x121   : > { %806 = vst.msk [vmem:[%s1358_s14 + $0x38] sm:$0xf] %vm791_vm2, %v773_v25  ;;  %v531_v29 = vpop.f32.mrf.mxu0 }
 0x122   : > { %v621_v30 = vadd.f32 %v620_v53, %v531_v29  ;;  %vm693_vm0 = vcmp.gt.f32.partialorder %v659_v59, 0.0  ;;  %v725_v31 = vmul.f32 0.2, %v659_v59 }
 0x124   : > { %vm678_vm1 = vcmp.gt.f32.partialorder %v621_v30, 0.0  ;;  %v710_v32 = vmul.f32 0.2, %v621_v30  ;;  %v757_v33 = vsel %vm693_vm0, %v659_v59, %v725_v31 }
 0x125   : > { %v789_v34 = vpack.c.bf16 %v757_v33, %v757_v33 }
 0x126   : > { %v742_v35 = vsel %vm678_vm1, %v621_v30, %v710_v32 }
 0x127   : > { %v774_v36 = vpack.c.bf16 %v742_v35, %v742_v35  ;;  %822 = vst.msk [vmem:[%s1358_s14 + $0x78] sm:$0xf] %vm791_vm2, %v789_v34  ;;  %v571_v38 = vpop.f32.mrf.mxu2 }
 0x128   : > { %v661_v39 = vadd.f32 %v660_v37, %v571_v38 }
 0x129   : > { %807 = vst.msk [vmem:[%s1358_s14 + $0x3c] sm:$0xf] %vm791_vm2, %v774_v36 }
 0x12a   : > { %vm694_vm3 = vcmp.gt.f32.partialorder %v661_v39, 0.0  ;;  %v726_v40 = vmul.f32 0.2, %v661_v39 }
 0x12c   : > { %v758_v41 = vsel %vm694_vm3, %v661_v39, %v726_v40 }
 0x12d   : > { %v790_v42 = vpack.c.bf16 %v758_v41, %v758_v41 }
 0x12f   : > { %823 = vst.msk [vmem:[%s1358_s14 + $0x7c] sm:$0xf] %vm791_vm2, %v790_v42 }
 0x130 PF: > { %s12_s11 = sadd.s32 1, %s1204_s11   ;;  %s1442_s9 = smov %s1200_s10 }
 0x131   : > { %p9_p5 = scmp.ge.s32.totalorder %s12_s11, 4   ;;  %s1443_s10 = smov %s1445_s12 }
 0x133   :  { %11 = sbr.rel (!%p9_p5) target bundleno = 2 (0x2), region = 61 }

// kernel: encoder_forward.5
= control target key start
LH: loop header
LB: loop body
LE: loop exit
PB: predicated region body
PF: predicated region fallthrough
CT: control target
= control target key end

     0   :  { %s1027_s15 = smov 0   ;;  %s1029_s16 = smov 0   ;;  %s1181_s0 = inlined_call_operand.vmem [shape: bf16[64,384], index: 0, kind: input, shape index: {}]   ;;  %s1182_s1 = inlined_call_operand.vmem [shape: bf16[384,16], index: 1, kind: input, shape index: {}]   ;;  %s1183_s2 = inlined_call_operand.vmem [shape: bf16[64,16], index: 2, kind: output, shape index: {0}]   ;;  %s1184_s3 = inlined_call_operand.vmem [shape: f32[2,8,16], index: 3, kind: output, shape index: {1}]   ;;  %s1185_s4 = inlined_call_operand.vmem [shape: f32[2,8,16], index: 4, kind: output, shape index: {2}]  }
   0x1   :  { %s1031_s17 = smov 0  }
   0x2 LB: > { %s24_s18 = sadd.s32 1, %s996_s16  ;;  %p786_p0 = scmp.ge.s32.totalorder %s1000_s17, 1  ;;  %s1000_s17 = sphi %s1031_s17, %s15_s17   ;;  %s996_s16 = sphi %s1029_s16, %s1187_s16   ;;  %s992_s15 = sphi %s1027_s15, %s1186_s15  }
   0x3   : > { %p25_p1 = scmp.ge.s32.totalorder %s24_s18, 2  ;;  %p196_p2 = scmp.lt.s32.totalorder %s1000_s17, 3 }
   0x5   : > { %s1189_s18 = smov (%p25_p1, %s24_s18), 0  ;;  %p197_p3 = pnand %p786_p0, %p196_p2 }
   0x6   : > { %s787_s11 = sshll.u32 (!%p197_p3), %s992_s15, 2  ;;  %p264_p5 = scmp.lt.s32.totalorder (!%p197_p3), %s992_s15, 1 }
   0x7   : > { %200 = sbr.rel (%p197_p3) target bundleno = 222 (0xde), region = 28  ;;  %p245_p4 = scmp.lt.s32.totalorder (!%p197_p3), %s787_s11, 7 }
   0xc   : > { %v928_v0 = vld [vmem:[%s1182_s1 + $0x38] sm:$0xff]  ;;  %v927_v3 = vld [vmem:[%s1182_s1 + $0x30] sm:$0xff]  ;;  %v926_v6 = vld [vmem:[%s1182_s1 + $0x28] sm:$0xff]  ;;  %s1191_s11 = smov (!%p245_p4, %s787_s11), 7  ;;  %vm604_vm0 = vcmask 125952   ;;  %vm567_vm1 = vcmask 130048  }
   0xd   : > { %v936_v1 = vld [vmem:[%s1182_s1 + $0x78] sm:$0xff]  ;;  %510 = vmatpush.bf16.msra.mxu0 %v928_v0  ;;  %v935_v4 = vld [vmem:[%s1182_s1 + $0x70] sm:$0xff]  ;;  %945 = vmatpush.bf16.msra.mxu3 %v928_v0  ;;  %v934_v7 = vld [vmem:[%s1182_s1 + $0x68] sm:$0xff]  ;;  %s953_s6 = smul.u32 12, %s1191_s11  ;;  %s790_s29 = sshll.u32 %s1191_s11, 2 }
   0xe   : > { %v944_v2 = vld [vmem:[%s1182_s1 + $0xb8] sm:$0xff]  ;;  %529 = vmatpush.bf16.msra.mxu1 %v936_v1  ;;  %v943_v5 = vld [vmem:[%s1182_s1 + $0xb0] sm:$0xff]  ;;  %v942_v8 = vld [vmem:[%s1182_s1 + $0xa8] sm:$0xff]  ;;  %s1193_s15 = smov (!%p264_p5, %s992_s15), 1 }
   0xf   : > { %548 = vmatpush.bf16.msra.mxu2 %v944_v2  ;;  %v925_v9 = vld [vmem:[%s1182_s1 + $0x20] sm:$0xff]  ;;  %v924_v12 = vld [vmem:[%s1182_s1 + $0x18] sm:$0xff]  ;;  %v923_v15 = vld [vmem:[%s1182_s1 + $0x10] sm:$0xff]  ;;  %s1114_s20 = scalar_lea.vmem %s1181_s0, %s953_s6  ;;  %s1144_s6 = scalar_lea.vmem %s1183_s2, %s790_s29 }
  0x10   : > { %v933_v10 = vld [vmem:[%s1182_s1 + $0x60] sm:$0xff]  ;;  %v932_v13 = vld [vmem:[%s1182_s1 + $0x58] sm:$0xff]  ;;  %v931_v16 = vld [vmem:[%s1182_s1 + $0x50] sm:$0xff]  ;;  %s791_s11 = sshll.u32 %s1193_s15, 3 }
  0x11   : > { %511 = vmatpush.bf16.msra.mxu0 %v927_v3  ;;  %946 = vmatpush.bf16.msra.mxu3 %v927_v3  ;;  %v941_v11 = vld [vmem:[%s1182_s1 + $0xa0] sm:$0xff]  ;;  %v940_v14 = vld [vmem:[%s1182_s1 + $0x98] sm:$0xff]  ;;  %v939_v17 = vld [vmem:[%s1182_s1 + $0x90] sm:$0xff]  ;;  %s270_s9 = scalar_lea.vmem %s1184_s3, %s791_s11  ;;  %s277_s13 = scalar_lea.vmem %s1185_s4, %s791_s11 }
  0x12   : > { %530 = vmatpush.bf16.msra.mxu1 %v935_v4  ;;  %v922_v18 = vld [vmem:[%s1182_s1 + $0x8] sm:$0xff]  ;;  %v921_v21 = vld [vmem:[%s1182_s1] sm:$0xff]  ;;  %v797_v27 = vld [vmem:[%s1114_s20 + $0xc] sm:$0xf0] }
  0x13   : > { %549 = vmatpush.bf16.msra.mxu2 %v943_v5  ;;  %v930_v19 = vld [vmem:[%s1182_s1 + $0x48] sm:$0xff]  ;;  %v929_v22 = vld [vmem:[%s1182_s1 + $0x40] sm:$0xff]  ;;  %v917_v29 = vld [vmem:[%s1114_s20 + $0x10] sm:$0xf0] }
  0x14   : > { %v938_v20 = vld [vmem:[%s1182_s1 + $0x88] sm:$0xff]  ;;  %v937_v23 = vld [vmem:[%s1182_s1 + $0x80] sm:$0xff]  ;;  %v807_v30 = vld [vmem:[%s1114_s20 + $0x18] sm:$0xf] }
  0x15   : > { %512 = vmatpush.bf16.msra.mxu0 %v926_v6  ;;  %947 = vmatpush.bf16.msra.mxu3 %v926_v6  ;;  %v795_v24 = vld [vmem:[%s1114_s20] sm:$0xf]  ;;  %v916_v25 = vld [vmem:[%s1114_s20 + $0x8] sm:$0xf0]  ;;  %v915_v26 = vld [vmem:[%s1114_s20 + $0x4] sm:$0xf] }
  0x16   : > { %531 = vmatpush.bf16.msra.mxu1 %v934_v7  ;;  %v803_v28 = vld [vmem:[%s1114_s20 + $0x8] sm:$0xf]  ;;  %v919_v31 = vld [vmem:[%s1114_s20 + $0x20] sm:$0xf0]  ;;  %v796_v32 = vor.u32 %v916_v25, %v795_v24  ;;  %v800_v33 = vor.u32 %v915_v26, %v797_v27  ;;  %v918_v36 = vld [vmem:[%s1114_s20 + $0x1c] sm:$0xf] }
  0x17   : > { %550 = vmatpush.bf16.msra.mxu2 %v942_v8  ;;  %v804_v34 = vor.u32 %v917_v29, %v803_v28  ;;  %v808_v35 = vor.u32 %v919_v31, %v807_v30  ;;  %v809_v37 = vld [vmem:[%s1114_s20 + $0x24] sm:$0xf0]  ;;  %v815_v38 = vld [vmem:[%s1114_s20 + $0x20] sm:$0xf]  ;;  %v920_v39 = vld [vmem:[%s1114_s20 + $0x28] sm:$0xf0] }
  0x18   : > { %v812_v40 = vor.u32 %v918_v36, %v809_v37  ;;  %v816_v41 = vor.u32 %v920_v39, %v815_v38 }
  0x19   : > { %513 = vmatpush.bf16.msra.mxu0 %v925_v9  ;;  %948 = vmatpush.bf16.msra.mxu3 %v925_v9 }
  0x1a   : > { %532 = vmatpush.bf16.msra.mxu1 %v933_v10 }
  0x1b   : > { %551 = vmatpush.bf16.msra.mxu2 %v941_v11 }
  0x1d   : > { %514 = vmatpush.bf16.msra.mxu0 %v924_v12  ;;  %949 = vmatpush.bf16.msra.mxu3 %v924_v12 }
  0x1e   : > { %533 = vmatpush.bf16.msra.mxu1 %v932_v13 }
  0x1f   : > { %552 = vmatpush.bf16.msra.mxu2 %v940_v14 }
  0x21   : > { %515 = vmatpush.bf16.msra.mxu0 %v923_v15  ;;  %950 = vmatpush.bf16.msra.mxu3 %v923_v15 }
  0x22   : > { %534 = vmatpush.bf16.msra.mxu1 %v931_v16 }
  0x23   : > { %553 = vmatpush.bf16.msra.mxu2 %v939_v17 }
  0x25   : > { %516 = vmatpush.bf16.msra.mxu0 %v922_v18  ;;  %951 = vmatpush.bf16.msra.mxu3 %v922_v18 }
  0x26   : > { %535 = vmatpush.bf16.msra.mxu1 %v930_v19 }
  0x27   : > { %554 = vmatpush.bf16.msra.mxu2 %v938_v20 }
  0x29   : > { %517 = vmatpush.bf16.msra.mxu0 %v921_v21  ;;  %952 = vmatpush.bf16.msra.mxu3 %v921_v21 }
  0x2a   : > { %536 = vmatpush.bf16.msra.mxu1 %v929_v22 }
  0x2b   : > { %555 = vmatpush.bf16.msra.mxu2 %v937_v23 }
  0x2c   : > { %518 = vmatmul.bf16.vlgmr.msra.gmra.mxu0 %v796_v32  ;;  %523 = vmatmul.bf16.vlgmr.msra.gmra.mxu3 %v808_v35 }
  0x2d   : > { %537 = vmatmul.bf16.vlgmr.msra.gmra.mxu1 %v800_v33 }
  0x2e   : > { %556 = vmatmul.bf16.vlgmr.msra.gmra.mxu2 %v804_v34 }
  0x3d   : > { %542 = vmatmul.bf16.gmra.mxu1 %v812_v40 }
  0x3e   : > { %561 = vmatmul.bf16.gmra.mxu2 %v816_v41 }
  0xa9   : > { %v519_v43 = vpop.f32.mrf.mxu0 }
  0xaa   : > { %v538_v42 = vpop.f32.mrf.mxu1 }
  0xab   : > { %v539_v44 = vadd.f32 %v538_v42, %v519_v43 }
  0xaf   : > { %v524_v55 = vpop.f32.mrf.mxu3 }
  0xb1   : > { %v557_v45 = vpop.f32.mrf.mxu2  ;;  %v521_v49 = vpop.f32.mrf.mxu0 }
  0xb2   : > { %v558_v46 = vadd.f32 %v557_v45, %v539_v44  ;;  %v540_v47 = vpop.f32.mrf.mxu1 }
  0xb3   : > { %v541_v50 = vadd.f32 %v540_v47, %v521_v49 }
  0xb4   : > { %v600_v48 = vpack.c.bf16 %v558_v46, %v558_v46  ;;  %v581_v62 = vmul.f32 %v558_v46, %v558_v46  ;;  %v568_v2 = vsel %vm567_vm1, %v558_v46, 0.0 }
  0xb6   : > { %605 = vst.msk [vmem:[%s1144_s6] sm:$0xf] %vm604_vm0, %v600_v48  ;;  %v585_v8 = vsel %vm567_vm1, %v581_v62, 0.0 }
  0xb7   : > { %v526_v1 = vpop.f32.mrf.mxu3 }
  0xb9   : > { %v559_v51 = vpop.f32.mrf.mxu2 }
  0xba   : > { %v560_v52 = vadd.f32 %v559_v51, %v541_v50  ;;  %v543_v53 = vpop.f32.mrf.mxu1 }
  0xbb   : > { %v544_v56 = vadd.f32 %v543_v53, %v524_v55 }
  0xbc   : > { %v601_v54 = vpack.c.bf16 %v560_v52, %v560_v52  ;;  %v582_v59 = vmul.f32 %v560_v52, %v560_v52  ;;  %v569_v63 = vsel %vm567_vm1, %v560_v52, 0.0 }
  0xbd   : > { %v570_v6 = vadd.f32 %v569_v63, %v568_v2 }
  0xbe   : > { %606 = vst.msk [vmem:[%s1144_s6 + $0x4] sm:$0xf] %vm604_vm0, %v601_v54  ;;  %v586_v3 = vsel %vm567_vm1, %v582_v59, 0.0 }
  0xbf   : > { %v587_v11 = vadd.f32 %v586_v3, %v585_v8 }
  0xc1   : > { %v562_v57 = vpop.f32.mrf.mxu2 }
  0xc2   : > { %v563_v58 = vadd.f32 %v562_v57, %v544_v56  ;;  %v545_v61 = vpop.f32.mrf.mxu1 }
  0xc3   : > { %v546_v5 = vadd.f32 %v545_v61, %v526_v1 }
  0xc4   : > { %v602_v60 = vpack.c.bf16 %v563_v58, %v563_v58  ;;  %v583_v0 = vmul.f32 %v563_v58, %v563_v58  ;;  %v571_v4 = vsel %vm567_vm1, %v563_v58, 0.0 }
  0xc5   : > { %v572_v12 = vadd.f32 %v571_v4, %v570_v6 }
  0xc6   : > { %607 = vst.msk [vmem:[%s1144_s6 + $0x8] sm:$0xf] %vm604_vm0, %v602_v60  ;;  %v588_v9 = vsel %vm567_vm1, %v583_v0, 0.0 }
  0xc7   : > { %v589_v16 = vadd.f32 %v588_v9, %v587_v11 }
  0xc9   : > { %v564_v7 = vpop.f32.mrf.mxu2 }
  0xca   : > { %v565_v10 = vadd.f32 %v564_v7, %v546_v5 }
  0xcc   : > { %v573_v13 = vsel %vm567_vm1, %v565_v10, 0.0  ;;  %v584_v14 = vmul.f32 %v565_v10, %v565_v10  ;;  %v603_v15 = vpack.c.bf16 %v565_v10, %v565_v10 }
  0xcd   : > { %v574_v17 = vadd.f32 %v573_v13, %v572_v12 }
  0xce   : > { %v590_v18 = vsel %vm567_vm1, %v584_v14, 0.0  ;;  %608 = vst.msk [vmem:[%s1144_s6 + $0xc] sm:$0xf] %vm604_vm0, %v603_v15 }
  0xcf   : > { %v575_v19 = vrot.slane %v574_v17, 4  ;;  %v591_v20 = vadd.f32 %v590_v18, %v589_v16 }
  0xd1   : > { %v576_v21 = vadd.f32 %v575_v19, %v574_v17  ;;  %v592_v22 = vrot.slane %v591_v20, 4 }
  0xd3   : > { %v577_v23 = vrot.slane %v576_v21, 2  ;;  %v593_v24 = vadd.f32 %v592_v22, %v591_v20 }
  0xd5   : > { %v578_v25 = vadd.f32 %v577_v23, %v576_v21  ;;  %v594_v26 = vrot.slane %v593_v24, 2 }
  0xd7   : > { %v579_v27 = vrot.slane %v578_v25, 1  ;;  %v595_v28 = vadd.f32 %v594_v26, %v593_v24 }
  0xd9   : > { %v580_v29 = vadd.f32 %v579_v27, %v578_v25  ;;  %v596_v30 = vrot.slane %v595_v28, 1 }
  0xdb   : > { %v597_v31 = vadd.f32 %v596_v30, %v595_v28  ;;  %598 = vst.msk [vmem:[%s270_s9] sm:$0xff] %vm567_vm1, %v580_v29 }
  0xdd   : > { %599 = vst.msk [vmem:[%s277_s13] sm:$0xff] %vm567_vm1, %v597_v31 }
  0xde PF: > { %s15_s17 = sadd.s32 1, %s1000_s17   ;;  %s1186_s15 = smov %s996_s16 }
  0xdf   : > { %p12_p6 = scmp.ge.s32.totalorder %s15_s17, 4   ;;  %s1187_s16 = smov %s1189_s18 }
  0xe1   :  { %14 = sbr.rel (!%p12_p6) target bundleno = 2 (0x2), region = 85 }

// kernel: encoder_forward.6
= control target key start
LH: loop header
LB: loop body
LE: loop exit
PB: predicated region body
PF: predicated region fallthrough
CT: control target
= control target key end

     0   :  { %vm86_vm0 = vcmask 125952   ;;  %s190_s0 = inlined_call_operand.vmem [shape: bf16[64,16], index: 0, kind: input, shape index: {}]   ;;  %s191_s1 = inlined_call_operand.vmem [shape: f32[1,16], index: 1, kind: input, shape index: {}]   ;;  %s192_s2 = inlined_call_operand.vmem [shape: f32[1,16], index: 2, kind: input, shape index: {}]   ;;  %s193_s3 = inlined_call_operand.vmem [shape: bf16[64,16], index: 3, kind: output, shape index: {}]  }
   0x1   :  { %v100_v0 = vld [vmem:[%s190_s0] sm:$0xff]   ;;  %v115_v5 = vld [vmem:[%s190_s0 + $0x8] sm:$0xff]   ;;  %v116_v8 = vld [vmem:[%s190_s0 + $0x10] sm:$0xff]  }
   0x2   :  { %v118_v1 = vld [vmem:[%s191_s1] ss:$0 sm:$0xff]  ;;  %v101_v2 = vunpack.c.l.bf16 %v100_v0  ;;  %v102_v4 = vunpack.c.h.bf16 %v100_v0  ;;  %v105_v6 = vunpack.c.l.bf16 %v115_v5  ;;  %v106_v7 = vunpack.c.h.bf16 %v115_v5  ;;  %v117_v9 = vld [vmem:[%s190_s0 + $0x18] sm:$0xff]  }
   0x3   :  { %v119_v3 = vld [vmem:[%s192_s2] ss:$0 sm:$0xff]  ;;  %v109_v12 = vunpack.c.l.bf16 %v116_v8  ;;  %v110_v13 = vunpack.c.h.bf16 %v116_v8  ;;  %v113_v16 = vunpack.c.l.bf16 %v117_v9  ;;  %v114_v17 = vunpack.c.h.bf16 %v117_v9 }
   0x4   :  { %v34_v10 = vmul.f32 %v118_v1, %v101_v2  ;;  %v35_v11 = vmul.f32 %v118_v1, %v102_v4  ;;  %v36_v14 = vmul.f32 %v118_v1, %v105_v6  ;;  %v37_v15 = vmul.f32 %v118_v1, %v106_v7 }
   0x5   :  { %v38_v20 = vmul.f32 %v118_v1, %v109_v12  ;;  %v39_v21 = vmul.f32 %v118_v1, %v110_v13  ;;  %v40_v24 = vmul.f32 %v118_v1, %v113_v16  ;;  %v41_v25 = vmul.f32 %v118_v1, %v114_v17 }
   0x6   :  { %v46_v18 = vadd.f32 %v119_v3, %v34_v10  ;;  %v47_v19 = vadd.f32 %v119_v3, %v35_v11  ;;  %v48_v22 = vadd.f32 %v119_v3, %v36_v14  ;;  %v49_v23 = vadd.f32 %v119_v3, %v37_v15 }
   0x7   :  { %v50_v32 = vadd.f32 %v119_v3, %v38_v20  ;;  %v51_v33 = vadd.f32 %v119_v3, %v39_v21  ;;  %v52_v42 = vadd.f32 %v119_v3, %v40_v24  ;;  %v53_v43 = vadd.f32 %v119_v3, %v41_v25 }
   0x8   :  { %vm54_vm1 = vcmp.gt.f32.partialorder %v46_v18, 0.0  ;;  %v62_v26 = vmul.f32 0.2, %v46_v18  ;;  %vm55_vm2 = vcmp.gt.f32.partialorder %v47_v19, 0.0  ;;  %v63_v27 = vmul.f32 0.2, %v47_v19 }
   0x9   :  { %vm56_vm3 = vcmp.gt.f32.partialorder %v48_v22, 0.0  ;;  %v64_v28 = vmul.f32 0.2, %v48_v22  ;;  %vm57_vm4 = vcmp.gt.f32.partialorder %v49_v23, 0.0  ;;  %v65_v29 = vmul.f32 0.2, %v49_v23 }
   0xa   :  { %v70_v30 = vsel %vm54_vm1, %v46_v18, %v62_v26  ;;  %v71_v31 = vsel %vm55_vm2, %v47_v19, %v63_v27  ;;  %vm58_vm5 = vcmp.gt.f32.partialorder %v50_v32, 0.0  ;;  %v66_v40 = vmul.f32 0.2, %v50_v32 }
   0xb   :  { %v78_v34 = vpack.c.bf16 %v70_v30, %v70_v30  ;;  %v79_v35 = vpack.c.bf16 %v71_v31, %v71_v31  ;;  %v72_v36 = vsel %vm56_vm3, %v48_v22, %v64_v28  ;;  %v73_v37 = vsel %vm57_vm4, %v49_v23, %v65_v29 }
   0xc   :  { %v80_v38 = vpack.c.bf16 %v72_v36, %v72_v36  ;;  %v81_v39 = vpack.c.bf16 %v73_v37, %v73_v37  ;;  %vm59_vm6 = vcmp.gt.f32.partialorder %v51_v33, 0.0  ;;  %v67_v41 = vmul.f32 0.2, %v51_v33 }
   0xd   :  { %87 = vst.msk [vmem:[%s193_s3] sm:$0xf] %vm86_vm0, %v78_v34  ;;  %v74_v44 = vsel %vm58_vm5, %v50_v32, %v66_v40  ;;  %vm60_vm7 = vcmp.gt.f32.partialorder %v52_v42, 0.0  ;;  %v68_v47 = vmul.f32 0.2, %v52_v42  ;;  %vm61_vm8 = vcmp.gt.f32.partialorder %v53_v43, 0.0 }
   0xe   :  { %88 = vst.msk [vmem:[%s193_s3 + $0x4] sm:$0xf] %vm86_vm0, %v79_v35  ;;  %v82_v45 = vpack.c.bf16 %v74_v44, %v74_v44  ;;  %v75_v46 = vsel %vm59_vm6, %v51_v33, %v67_v41  ;;  %v69_v49 = vmul.f32 0.2, %v53_v43 }
   0xf   :  { %89 = vst.msk [vmem:[%s193_s3 + $0x8] sm:$0xf] %vm86_vm0, %v80_v38  ;;  %v83_v48 = vpack.c.bf16 %v75_v46, %v75_v46  ;;  %v76_v50 = vsel %vm60_vm7, %v52_v42, %v68_v47 }
  0x10   :  { %90 = vst.msk [vmem:[%s193_s3 + $0xc] sm:$0xf] %vm86_vm0, %v81_v39  ;;  %v84_v51 = vpack.c.bf16 %v76_v50, %v76_v50  ;;  %v77_v52 = vsel %vm61_vm8, %v53_v43, %v69_v49 }
  0x11   :  { %91 = vst.msk [vmem:[%s193_s3 + $0x10] sm:$0xf] %vm86_vm0, %v82_v45  ;;  %v85_v53 = vpack.c.bf16 %v77_v52, %v77_v52 }
  0x12   :  { %92 = vst.msk [vmem:[%s193_s3 + $0x14] sm:$0xf] %vm86_vm0, %v83_v48 }
  0x13   :  { %93 = vst.msk [vmem:[%s193_s3 + $0x18] sm:$0xf] %vm86_vm0, %v84_v51 }
  0x14   :  { %94 = vst.msk [vmem:[%s193_s3 + $0x1c] sm:$0xf] %vm86_vm0, %v85_v53 }

// kernel: encoder_forward.7
= control target key start
LH: loop header
LB: loop body
LE: loop exit
PB: predicated region body
PF: predicated region fallthrough
CT: control target
= control target key end

     0   :  { %vm173_vm0 = vcmask 130048   ;;  %s328_s1 = inlined_call_operand.vmem [shape: bf16[256,16], index: 1, kind: input, shape index: {}]   ;;  %s329_s0 = inlined_call_operand.vmem [shape: bf16[8,256], index: 0, kind: input, shape index: {}]   ;;  %s330_s2 = inlined_call_operand.vmem [shape: f32[8,16], index: 2, kind: output, shape index: {}]  }
   0x1   :  { %v250_v0 = vld [vmem:[%s328_s1 + $0x38] sm:$0xff]  ;;  %v249_v2 = vld [vmem:[%s328_s1 + $0x30] sm:$0xff]  ;;  %v248_v4 = vld [vmem:[%s328_s1 + $0x28] sm:$0xff] }
   0x2   :  { %v258_v1 = vld [vmem:[%s328_s1 + $0x78] sm:$0xff]  ;;  %147 = vmatpush.bf16.msra.mxu0 %v250_v0  ;;  %v257_v3 = vld [vmem:[%s328_s1 + $0x70] sm:$0xff]  ;;  %v256_v5 = vld [vmem:[%s328_s1 + $0x68] sm:$0xff] }
   0x3   :  { %160 = vmatpush.bf16.msra.mxu1 %v258_v1  ;;  %v247_v6 = vld [vmem:[%s328_s1 + $0x20] sm:$0xff]  ;;  %v246_v8 = vld [vmem:[%s328_s1 + $0x18] sm:$0xff]  ;;  %v245_v10 = vld [vmem:[%s328_s1 + $0x10] sm:$0xff] }
   0x4   :  { %v255_v7 = vld [vmem:[%s328_s1 + $0x60] sm:$0xff]  ;;  %v254_v9 = vld [vmem:[%s328_s1 + $0x58] sm:$0xff]  ;;  %v253_v11 = vld [vmem:[%s328_s1 + $0x50] sm:$0xff] }
   0x5   :  { %v244_v12 = vld [vmem:[%s328_s1 + $0x8] sm:$0xff]  ;;  %v11_v14 = vld [vmem:[%s329_s0] sm:$0xff] }
   0x6   :  { %148 = vmatpush.bf16.msra.mxu0 %v249_v2  ;;  %v252_v13 = vld [vmem:[%s328_s1 + $0x48] sm:$0xff]  ;;  %v45_v15 = vunpack.c.l.b16 %v11_v14  ;;  %v46_v16 = vunpack.c.h.b16 %v11_v14  ;;  %v243_v17 = vld [vmem:[%s328_s1] sm:$0xff] }
   0x7   :  { %161 = vmatpush.bf16.msra.mxu1 %v257_v3  ;;  %v251_v18 = vld [vmem:[%s328_s1 + $0x40] sm:$0xff] }
   0x8   :  { %v47_v19 = vpack.c.b16 %v45_v15, %v45_v15  ;;  %v48_v20 = vpack.c.b16 %v46_v16, %v46_v16 }
   0xa   :  { %149 = vmatpush.bf16.msra.mxu0 %v248_v4 }
   0xb   :  { %162 = vmatpush.bf16.msra.mxu1 %v256_v5 }
   0xe   :  { %150 = vmatpush.bf16.msra.mxu0 %v247_v6 }
   0xf   :  { %163 = vmatpush.bf16.msra.mxu1 %v255_v7 }
  0x12   :  { %151 = vmatpush.bf16.msra.mxu0 %v246_v8 }
  0x13   :  { %164 = vmatpush.bf16.msra.mxu1 %v254_v9 }
  0x16   :  { %152 = vmatpush.bf16.msra.mxu0 %v245_v10 }
  0x17   :  { %165 = vmatpush.bf16.msra.mxu1 %v253_v11 }
  0x1a   :  { %153 = vmatpush.bf16.msra.mxu0 %v244_v12 }
  0x1b   :  { %166 = vmatpush.bf16.msra.mxu1 %v252_v13 }
  0x1e   :  { %154 = vmatpush.bf16.msra.mxu0 %v243_v17 }
  0x1f   :  { %167 = vmatpush.bf16.msra.mxu1 %v251_v18 }
  0x21   :  { %155 = vmatmul.bf16.vlgmr.msra.gmra.mxu0 %v47_v19 }
  0x22   :  { %168 = vmatmul.bf16.vlgmr.msra.gmra.mxu1 %v48_v20 }
  0x9e   :  { %v156_v21 = vpop.f32.mrf.mxu0 }
  0x9f   :  { %v169_v22 = vpop.f32.mrf.mxu1 }
  0xa0   :  { %v170_v23 = vadd.f32 %v169_v22, %v156_v21 }
  0xa2   :  { %174 = vst.msk [vmem:[%s330_s2] sm:$0xff] %vm173_vm0, %v170_v23 }
  0xa6   :  { %v158_v24 = vpop.f32.mrf.mxu0 }
  0xa7   :  { %v171_v25 = vpop.f32.mrf.mxu1 }

</bundles_post_ra>
